<compile_context>
chip_gen: v5e
topology: v5e:2x2
jax: 0.10.0
libtpu: 0.0.40
codegen_flags: <defaults>
</compile_context>

<pallas_src>
import jax
import jax.numpy as jnp
from jax.experimental import pallas as pl
from jax.experimental.pallas import tpu as pltpu

BN_EPS = 1e-5
LANE = 128
SUB_BF16 = 16  # bf16 sublane tile


def _round_up(n, m):
    return ((n + m - 1) // m) * m


def _cdiv(a, b):
    return -(-a // b)


# --------------------------------------------------------------------------
# Kernel
# --------------------------------------------------------------------------
def _make_kernel(layout, H, Cpad):
    hd2 = H // 2
    f32, bf16 = jnp.float32, jnp.bfloat16

    def kernel(x_ref, w_ref, b_ref, out_ref):
        V, T, Bblk, D = x_ref.shape

        def W(name):                      # packed-weight slab lookup (bf16)
            off, rows, cols = layout[name]
            return w_ref[off:off + rows, :cols]

        def bias(row, n):                 # packed-bias slab lookup (f32)
            return b_ref[row:row + 1, :n]

        xf = x_ref[...].astype(f32)                               # (V,T,Bblk,D)

        # ---- view attention: all V views in one batched matmul pair ----
        summ = jnp.mean(xf, axis=1)                               # (V,Bblk,D)
        summ2 = summ.reshape(V * Bblk, D).astype(bf16)
        a1 = jnp.dot(summ2, W("wa1"), preferred_element_type=f32) + bias(0, hd2)
        a1 = jnp.maximum(a1, 0.0)
        raw = jnp.dot(a1.astype(bf16), W("wa2"),
                      preferred_element_type=f32) + bias(1, 1)    # (V*Bblk,1)
        raw = raw.reshape(V, Bblk, 1)

        m = jnp.max(raw, axis=0)                                  # (Bblk,1)
        es = jnp.exp(raw - m)                                     # (V,Bblk,1)
        denom = jnp.sum(es, axis=0)                               # (Bblk,1)
        wts = es * pl.reciprocal(denom, approx=True)              # softmax(V)

        # ---- weighted fusion over views (f32 elementwise) ----
        fused = jnp.sum(xf * wts[:, None, :, :], axis=0)          # (T,Bblk,D)
        fused = fused.reshape(T * Bblk, D).astype(bf16)           # time-major

        # ---- fusion projection + ReLU ----
        h = jnp.dot(fused, W("wp"), preferred_element_type=f32) + bias(2, H)
        h = jnp.maximum(h, 0.0)                                   # (T*Bblk,H)

        # ---- Conv1d(k=3,p=1) + folded eval-BN + ReLU, packed-tap matmul ----
        def conv_bn_relu(a, wname, brow):
            a16 = a.astype(bf16)
            zrow = jnp.zeros((Bblk, H), bf16)
            prev = jnp.concatenate([zrow, a16[:(T - 1) * Bblk]], axis=0)  # x[t-1]
            nxt = jnp.concatenate([a16[Bblk:], zrow], axis=0)             # x[t+1]
            taps = jnp.concatenate([prev, a16, nxt], axis=-1)             # (T*Bblk,3H)
            y = jnp.dot(taps, W(wname), preferred_element_type=f32) + bias(brow, H)
            return jnp.maximum(y, 0.0)

        o1 = conv_bn_relu(h, "wc1", 3)
        o2 = conv_bn_relu(o1, "wc2", 4)

        # ---- fc1: T accumulated (Bblk,H)@(H,H) matmuls (no relayout) ----
        woff = layout["wfc1"][0]
        o2b = o2.astype(bf16)
        acc = jnp.zeros((Bblk, H), f32)
        for t in range(T):
            acc = acc + jnp.dot(o2b[t * Bblk:(t + 1) * Bblk, :],
                                w_ref[woff + t * H:woff + (t + 1) * H, :H],
                                preferred_element_type=f32)
        f1 = jnp.maximum(acc + bias(5, H), 0.0)
        # Dropout(0.5) is the identity at inference.

        # ---- fc2: lane-padded classifier -> full-width unmasked store ----
        logits = jnp.dot(f1.astype(bf16), W("wfc2"),
                         preferred_element_type=f32) + bias(6, Cpad)
        out_ref[...] = logits.astype(out_ref.dtype)

    return kernel


# --------------------------------------------------------------------------
# Wrapper
# --------------------------------------------------------------------------
def multiview_forward(x, kp, num_classes, block_b=256):
    """x: (B, V, T, D) float. Returns (B, num_classes) float32."""
    B, V, T, D = x.shape
    H, Cpad, layout = kp["H"], kp["Cpad"], kp["layout"]

    # Batch block: multiple of 16 (bf16 sublane tile), close to block_b, with an
    # even number (>=2) of grid steps so the "parallel" axis shards across both
    # v7x TensorCores (harmless on single-TC v5e/v6e).
    k = max(1, _cdiv(B, 2 * block_b))
    Bblk = max(SUB_BF16, _round_up(_cdiv(B, 2 * k), SUB_BF16))
    Bblk = min(Bblk, _round_up(block_b, SUB_BF16))
    steps = max(2, _cdiv(B, Bblk))
    if steps % 2:
        steps += 1
    B_pad = steps * Bblk

    # Host-side relayout: time-major (V, T, B, D), bf16, batch padded.
    x_t = jnp.transpose(x.astype(jnp.bfloat16), (1, 2, 0, 3))
    if B_pad != B:
        x_t = jnp.pad(x_t, ((0, 0), (0, 0), (0, B_pad - B), (0, 0)))

    out = pl.pallas_call(
        _make_kernel(layout, H, Cpad),
        out_shape=jax.ShapeDtypeStruct((B_pad, Cpad), jnp.float32),
        grid=(steps,),
        in_specs=[
            pl.BlockSpec((V, T, Bblk, D), lambda b: (0, 0, b, 0)),
            pl.BlockSpec(kp["w"].shape, lambda b: (0, 0)),
            pl.BlockSpec(kp["b"].shape, lambda b: (0, 0)),
        ],
        out_specs=pl.BlockSpec((Bblk, Cpad), lambda b: (b, 0)),
        compiler_params=pltpu.CompilerParams(
            dimension_semantics=("parallel",),
            vmem_limit_bytes=32 * 1024 * 1024,
        ),
    )(x_t, kp["w"], kp["b"])
    return out[:B, :num_classes]


# --------------------------------------------------------------------------
# Parameter construction (PyTorch layout) + packing for the kernel
# --------------------------------------------------------------------------
def init_torch_params(key, feat_dim, seq_len, num_views, hidden_dim, num_classes):
    D, T, V, H, C = feat_dim, seq_len, num_views, hidden_dim, num_classes
    ks = iter(jax.random.split(key, 16))

    def rnd(shape, fan_in):
        return jax.random.normal(next(ks), shape, jnp.float32) / jnp.sqrt(float(fan_in))

    p = {}
    p["attn_w1"] = rnd((H // 2, H), H)
    p["attn_b1"] = rnd((H // 2,), H)
    p["attn_w2"] = rnd((1, H // 2), H // 2)
    p["attn_b2"] = rnd((1,), H // 2)
    p["view_weights"] = jnp.ones((V,), jnp.float32)   # unused in forward (as in PyTorch)
    p["proj_w"] = rnd((H, D), D)
    p["proj_b"] = rnd((H,), D)
    p["conv1_w"] = rnd((H, H, 3), 3 * H)
    p["conv1_b"] = rnd((H,), 3 * H)
    p["conv2_w"] = rnd((H, H, 3), 3 * H)
    p["conv2_b"] = rnd((H,), 3 * H)
    p["fc1_w"] = rnd((H, H * T), H * T)
    p["fc1_b"] = rnd((H,), H * T)
    p["fc2_w"] = rnd((C, H), H)
    p["fc2_b"] = rnd((C,), H)
    return p


def to_kernel_params(p, seq_len):
    H, D = p["proj_w"].shape
    T = seq_len
    C = p["fc2_w"].shape[0]
    Cpad = _round_up(C, LANE)
    hd2 = H // 2

    # Fresh-init BatchNorm1d in eval mode: gamma=1, beta=0, mean=0, var=1.
    bn_scale = 1.0 / (1.0 + BN_EPS) ** 0.5

    def pack_conv(w, b):
        # taps packed as [prev(k=0) | cur(k=1) | next(k=2)], each (H_in, H_out)
        wp_ = jnp.concatenate([w[:, :, 0].T, w[:, :, 1].T, w[:, :, 2].T], axis=0)
        return wp_ * bn_scale, b * bn_scale

    wc1, bc1 = pack_conv(p["conv1_w"], p["conv1_b"])
    wc2, bc2 = pack_conv(p["conv2_w"], p["conv2_b"])

    # fc1 flatten index in PyTorch is c*T + t; kernel uses per-t (H,H) slabs.
    wfc1 = jnp.transpose(p["fc1_w"].reshape(H, H, T), (2, 1, 0)).reshape(T * H, H)

    mats = {
        "wa1": p["attn_w1"].T,     # (D, H/2)   (feat_dim must equal hidden_dim)
        "wa2": p["attn_w2"].T,     # (H/2, 1)
        "wp": p["proj_w"].T,       # (D, H)
        "wc1": wc1, "wc2": wc2,    # (3H, H) with eval-BN folded
        "wfc1": wfc1,              # (T*H, H)
        "wfc2": p["fc2_w"].T,      # (H, C)
    }

    width = max(LANE, Cpad)
    layout, off = {}, 0
    for name in ("wa1", "wa2", "wp", "wc1", "wc2", "wfc1", "wfc2"):
        rows, cols = mats[name].shape
        layout[name] = (off, rows, Cpad if name == "wfc2" else cols)
        off += _round_up(rows, SUB_BF16)
    total = _round_up(off, SUB_BF16)

    wpack = jnp.zeros((total, width), jnp.float32)
    for name, mat in mats.items():
        roff = layout[name][0]
        wpack = wpack.at[roff:roff + mat.shape[0], :mat.shape[1]].set(mat)
    wpack = wpack.astype(jnp.bfloat16)

    bpack = jnp.zeros((8, width), jnp.float32)
    bpack = bpack.at[0, :hd2].set(p["attn_b1"])
    bpack = bpack.at[1, :1].set(p["attn_b2"])
    bpack = bpack.at[2, :H].set(p["proj_b"])
    bpack = bpack.at[3, :H].set(bc1)
    bpack = bpack.at[4, :H].set(bc2)
    bpack = bpack.at[5, :H].set(p["fc1_b"])
    bpack = bpack.at[6, :C].set(p["fc2_b"])

    return {"w": wpack, "b": bpack, "layout": layout, "H": H, "Cpad": Cpad}


# --------------------------------------------------------------------------
# Pure-JAX reference reproducing the PyTorch forward (f32, eval-mode BN)
# --------------------------------------------------------------------------
def torch_reference(x, p):
    B, V, T, D = x.shape
    summary = x.mean(axis=2)                                            # (B, V, D)
    a1 = jnp.maximum(summary @ p["attn_w1"].T + p["attn_b1"], 0.0)
    raw_w = (a1 @ p["attn_w2"].T + p["attn_b2"])[..., 0]                # (B, V)
    w = jax.nn.softmax(raw_w, axis=1)
    fused = (w[:, :, None, None] * x).sum(axis=1)                       # (B, T, D)
    fused = jnp.maximum(fused @ p["proj_w"].T + p["proj_b"], 0.0)       # (B, T, H)
    fused = jnp.transpose(fused, (0, 2, 1))                             # (B, H, T)

    def conv1d(inp, wt, b):                                             # inp (B,Cin,T)
        pad = jnp.pad(inp, ((0, 0), (0, 0), (1, 1)))
        Tn = inp.shape[2]
        y = (jnp.einsum('bci,oc->boi', pad[:, :, 0:Tn], wt[:, :, 0])
             + jnp.einsum('bci,oc->boi', pad[:, :, 1:Tn + 1], wt[:, :, 1])
             + jnp.einsum('bci,oc->boi', pad[:, :, 2:Tn + 2], wt[:, :, 2]))
        return y + b[None, :, None]

    inv = 1.0 / (1.0 + BN_EPS) ** 0.5                                   # eval-mode BN
    out = jnp.maximum(conv1d(fused, p["conv1_w"], p["conv1_b"]) * inv, 0.0)
    out = jnp.maximum(conv1d(out, p["conv2_w"], p["conv2_b"]) * inv, 0.0)
    flat = out.reshape(B, -1)
    f1 = jnp.maximum(flat @ p["fc1_w"].T + p["fc1_b"], 0.0)
    return f1 @ p["fc2_w"].T + p["fc2_b"]


if __name__ == "__main__":
    # feat_dim must equal hidden_dim for the PyTorch attn_head to type-check.
    feat_dim, seq_len, num_views, hidden_dim, num_classes = 32, 8, 3, 32, 5
    B = 2

    key = jax.random.PRNGKey(0)
    kx, kparam = jax.random.split(key)
    x = jax.random.normal(kx, (B, num_views, seq_len, feat_dim), jnp.float32)

    torch_p = init_torch_params(kparam, feat_dim, seq_len, num_views,
                                hidden_dim, num_classes)
    kern_p = to_kernel_params(torch_p, seq_len)

    out = multiview_forward(x, kern_p, num_classes)
    out = jax.block_until_ready(out)

    ref = torch_reference(x, torch_p)
    assert out.shape == (B, num_classes)
    # bf16 matmul operands with f32 accumulation -> loosened tolerance.
    assert jnp.allclose(out, ref, atol=5e-2, rtol=5e-2), \
        float(jnp.max(jnp.abs(out - ref)))
    print("KERNEL_OK")
</pallas_src>

<mosaic_0001>
module attributes {stable_mosaic.version = 11 : i64} {
  func.func @kernel(%arg0: i32, %arg1: memref<3x8x16x32xbf16, #tpu.memory_space<vmem>>, %arg2: memref<560x128xbf16, #tpu.memory_space<vmem>>, %arg3: memref<8x128xf32, #tpu.memory_space<vmem>>, %arg4: memref<16x128xf32, #tpu.memory_space<vmem>>) attributes {dimension_semantics = [#tpu.dimension_semantics<parallel>], iteration_bounds = array<i64: 2>, scalar_prefetch = 0 : i64, scratch_operands = 0 : i64, tpu.core_type = #tpu.core_type<tc>, window_params = [{transform_indices = @transform_0, window_bounds = array<i64: 3, 8, 16, 32>}, {pipeline_mode = #tpu.pipeline_mode<synchronous>, transform_indices = @transform_1, window_bounds = array<i64: 560, 128>}, {pipeline_mode = #tpu.pipeline_mode<synchronous>, transform_indices = @transform_2, window_bounds = array<i64: 8, 128>}, {transform_indices = @transform_3, window_bounds = array<i64: 16, 128>}]} {
    %c0 = arith.constant 0 : index
    %c0_0 = arith.constant 0 : index
    %c0_1 = arith.constant 0 : index
    %c0_2 = arith.constant 0 : index
    %0 = vector.load %arg1[%c0, %c0_0, %c0_1, %c0_2] : memref<3x8x16x32xbf16, #tpu.memory_space<vmem>>, vector<3x8x16x32xbf16>
    %1 = arith.extf %0 : vector<3x8x16x32xbf16> to vector<3x8x16x32xf32>
    %cst = arith.constant dense<0.000000e+00> : vector<3x16x32xf32>
    %2 = vector.multi_reduction <add>, %1, %cst [1] : vector<3x8x16x32xf32> to vector<3x16x32xf32>
    %cst_3 = arith.constant 8.000000e+00 : f32
    %3 = vector.broadcast %cst_3 : f32 to vector<3x16x32xf32>
    %4 = arith.divf %2, %3 : vector<3x16x32xf32>
    %5 = vector.shape_cast %4 : vector<3x16x32xf32> to vector<48x32xf32>
    %6 = arith.truncf %5 : vector<48x32xf32> to vector<48x32xbf16>
    %c0_4 = arith.constant 0 : index
    %c0_5 = arith.constant 0 : index
    %7 = vector.load %arg2[%c0_4, %c0_5] : memref<560x128xbf16, #tpu.memory_space<vmem>>, vector<32x16xbf16>
    %cst_6 = arith.constant dense<0.000000e+00> : vector<48x16xf32>
    %8 = tpu.matmul %6, %7, %cst_6 {dimension_numbers = #tpu.dot_dimension_numbers<[1], [0], [0], [1], [0, 0, 1, 1], [], []>} : vector<48x32xbf16>, vector<32x16xbf16>, vector<48x16xf32> -> vector<48x16xf32>
    %c0_7 = arith.constant 0 : index
    %c0_8 = arith.constant 0 : index
    %9 = vector.load %arg3[%c0_7, %c0_8] : memref<8x128xf32, #tpu.memory_space<vmem>>, vector<1x16xf32>
    %10 = vector.broadcast %9 : vector<1x16xf32> to vector<48x16xf32>
    %11 = arith.addf %8, %10 : vector<48x16xf32>
    %cst_9 = arith.constant 0.000000e+00 : f32
    %12 = vector.broadcast %cst_9 : f32 to vector<48x16xf32>
    %13 = arith.maximumf %11, %12 : vector<48x16xf32>
    %14 = arith.truncf %13 : vector<48x16xf32> to vector<48x16xbf16>
    %c32 = arith.constant 32 : index
    %c0_10 = arith.constant 0 : index
    %15 = vector.load %arg2[%c32, %c0_10] : memref<560x128xbf16, #tpu.memory_space<vmem>>, vector<16x1xbf16>
    %cst_11 = arith.constant dense<0.000000e+00> : vector<48x1xf32>
    %16 = tpu.matmul %14, %15, %cst_11 {dimension_numbers = #tpu.dot_dimension_numbers<[1], [0], [0], [1], [0, 0, 1, 1], [], []>} : vector<48x16xbf16>, vector<16x1xbf16>, vector<48x1xf32> -> vector<48x1xf32>
    %c1 = arith.constant 1 : index
    %c0_12 = arith.constant 0 : index
    %17 = vector.load %arg3[%c1, %c0_12] : memref<8x128xf32, #tpu.memory_space<vmem>>, vector<1x1xf32>
    %18 = vector.broadcast %17 : vector<1x1xf32> to vector<48x1xf32>
    %19 = arith.addf %16, %18 : vector<48x1xf32>
    %20 = vector.shape_cast %19 : vector<48x1xf32> to vector<3x16x1xf32>
    %cst_13 = arith.constant dense<0xFF800000> : vector<16x1xf32>
    %21 = vector.multi_reduction <maximumf>, %20, %cst_13 [0] : vector<3x16x1xf32> to vector<16x1xf32>
    %22 = vector.shape_cast %21 : vector<16x1xf32> to vector<1x16x1xf32>
    %23 = vector.broadcast %22 : vector<1x16x1xf32> to vector<3x16x1xf32>
    %24 = arith.subf %20, %23 : vector<3x16x1xf32>
    %25 = math.exp %24 : vector<3x16x1xf32>
    %cst_14 = arith.constant dense<0.000000e+00> : vector<16x1xf32>
    %26 = vector.multi_reduction <add>, %25, %cst_14 [0] : vector<3x16x1xf32> to vector<16x1xf32>
    %27 = tpu.reciprocal %26 {approx = true} : vector<16x1xf32> -> vector<16x1xf32>
    %28 = vector.shape_cast %27 : vector<16x1xf32> to vector<1x16x1xf32>
    %29 = vector.broadcast %28 : vector<1x16x1xf32> to vector<3x16x1xf32>
    %30 = arith.mulf %25, %29 : vector<3x16x1xf32>
    %31 = vector.shape_cast %30 : vector<3x16x1xf32> to vector<3x1x16x1xf32>
    %32 = vector.broadcast %31 : vector<3x1x16x1xf32> to vector<3x8x16x32xf32>
    %33 = arith.mulf %1, %32 : vector<3x8x16x32xf32>
    %cst_15 = arith.constant dense<0.000000e+00> : vector<8x16x32xf32>
    %34 = vector.multi_reduction <add>, %33, %cst_15 [0] : vector<3x8x16x32xf32> to vector<8x16x32xf32>
    %35 = vector.shape_cast %34 : vector<8x16x32xf32> to vector<128x32xf32>
    %36 = arith.truncf %35 : vector<128x32xf32> to vector<128x32xbf16>
    %c48 = arith.constant 48 : index
    %c0_16 = arith.constant 0 : index
    %37 = vector.load %arg2[%c48, %c0_16] : memref<560x128xbf16, #tpu.memory_space<vmem>>, vector<32x32xbf16>
    %cst_17 = arith.constant dense<0.000000e+00> : vector<128x32xf32>
    %38 = tpu.matmul %36, %37, %cst_17 {dimension_numbers = #tpu.dot_dimension_numbers<[1], [0], [0], [1], [0, 0, 1, 1], [], []>} : vector<128x32xbf16>, vector<32x32xbf16>, vector<128x32xf32> -> vector<128x32xf32>
    %c2 = arith.constant 2 : index
    %c0_18 = arith.constant 0 : index
    %39 = vector.load %arg3[%c2, %c0_18] : memref<8x128xf32, #tpu.memory_space<vmem>>, vector<1x32xf32>
    %40 = vector.broadcast %39 : vector<1x32xf32> to vector<128x32xf32>
    %41 = arith.addf %38, %40 : vector<128x32xf32>
    %cst_19 = arith.constant 0.000000e+00 : f32
    %42 = vector.broadcast %cst_19 : f32 to vector<128x32xf32>
    %43 = arith.maximumf %41, %42 : vector<128x32xf32>
    %44 = arith.truncf %43 : vector<128x32xf32> to vector<128x32xbf16>
    %cst_20 = arith.constant 0.000000e+00 : bf16
    %45 = vector.broadcast %cst_20 : bf16 to vector<16x32xbf16>
    %46 = vector.extract_strided_slice %44 {offsets = [0, 0], sizes = [112, 32], strides = [1, 1]} : vector<128x32xbf16> to vector<112x32xbf16>
    %47 = tpu.concatenate %45, %46 in 0 : vector<16x32xbf16>, vector<112x32xbf16> -> vector<128x32xbf16>
    %48 = vector.extract_strided_slice %44 {offsets = [16, 0], sizes = [112, 32], strides = [1, 1]} : vector<128x32xbf16> to vector<112x32xbf16>
    %49 = tpu.concatenate %48, %45 in 0 : vector<112x32xbf16>, vector<16x32xbf16> -> vector<128x32xbf16>
    %50 = tpu.concatenate %47, %44, %49 in 1 : vector<128x32xbf16>, vector<128x32xbf16>, vector<128x32xbf16> -> vector<128x96xbf16>
    %c80 = arith.constant 80 : index
    %c0_21 = arith.constant 0 : index
    %51 = vector.load %arg2[%c80, %c0_21] : memref<560x128xbf16, #tpu.memory_space<vmem>>, vector<96x32xbf16>
    %cst_22 = arith.constant dense<0.000000e+00> : vector<128x32xf32>
    %52 = tpu.matmul %50, %51, %cst_22 {dimension_numbers = #tpu.dot_dimension_numbers<[1], [0], [0], [1], [0, 0, 1, 1], [], []>} : vector<128x96xbf16>, vector<96x32xbf16>, vector<128x32xf32> -> vector<128x32xf32>
    %c3 = arith.constant 3 : index
    %c0_23 = arith.constant 0 : index
    %53 = vector.load %arg3[%c3, %c0_23] : memref<8x128xf32, #tpu.memory_space<vmem>>, vector<1x32xf32>
    %54 = vector.broadcast %53 : vector<1x32xf32> to vector<128x32xf32>
    %55 = arith.addf %52, %54 : vector<128x32xf32>
    %cst_24 = arith.constant 0.000000e+00 : f32
    %56 = vector.broadcast %cst_24 : f32 to vector<128x32xf32>
    %57 = arith.maximumf %55, %56 : vector<128x32xf32>
    %58 = arith.truncf %57 : vector<128x32xf32> to vector<128x32xbf16>
    %cst_25 = arith.constant 0.000000e+00 : bf16
    %59 = vector.broadcast %cst_25 : bf16 to vector<16x32xbf16>
    %60 = vector.extract_strided_slice %58 {offsets = [0, 0], sizes = [112, 32], strides = [1, 1]} : vector<128x32xbf16> to vector<112x32xbf16>
    %61 = tpu.concatenate %59, %60 in 0 : vector<16x32xbf16>, vector<112x32xbf16> -> vector<128x32xbf16>
    %62 = vector.extract_strided_slice %58 {offsets = [16, 0], sizes = [112, 32], strides = [1, 1]} : vector<128x32xbf16> to vector<112x32xbf16>
    %63 = tpu.concatenate %62, %59 in 0 : vector<112x32xbf16>, vector<16x32xbf16> -> vector<128x32xbf16>
    %64 = tpu.concatenate %61, %58, %63 in 1 : vector<128x32xbf16>, vector<128x32xbf16>, vector<128x32xbf16> -> vector<128x96xbf16>
    %c176 = arith.constant 176 : index
    %c0_26 = arith.constant 0 : index
    %65 = vector.load %arg2[%c176, %c0_26] : memref<560x128xbf16, #tpu.memory_space<vmem>>, vector<96x32xbf16>
    %cst_27 = arith.constant dense<0.000000e+00> : vector<128x32xf32>
    %66 = tpu.matmul %64, %65, %cst_27 {dimension_numbers = #tpu.dot_dimension_numbers<[1], [0], [0], [1], [0, 0, 1, 1], [], []>} : vector<128x96xbf16>, vector<96x32xbf16>, vector<128x32xf32> -> vector<128x32xf32>
    %c4 = arith.constant 4 : index
    %c0_28 = arith.constant 0 : index
    %67 = vector.load %arg3[%c4, %c0_28] : memref<8x128xf32, #tpu.memory_space<vmem>>, vector<1x32xf32>
    %68 = vector.broadcast %67 : vector<1x32xf32> to vector<128x32xf32>
    %69 = arith.addf %66, %68 : vector<128x32xf32>
    %cst_29 = arith.constant 0.000000e+00 : f32
    %70 = vector.broadcast %cst_29 : f32 to vector<128x32xf32>
    %71 = arith.maximumf %69, %70 : vector<128x32xf32>
    %72 = arith.truncf %71 : vector<128x32xf32> to vector<128x32xbf16>
    %cst_30 = arith.constant 0.000000e+00 : f32
    %73 = vector.broadcast %cst_30 : f32 to vector<16x32xf32>
    %74 = vector.extract_strided_slice %72 {offsets = [0, 0], sizes = [16, 32], strides = [1, 1]} : vector<128x32xbf16> to vector<16x32xbf16>
    %c272 = arith.constant 272 : index
    %c0_31 = arith.constant 0 : index
    %75 = vector.load %arg2[%c272, %c0_31] : memref<560x128xbf16, #tpu.memory_space<vmem>>, vector<32x32xbf16>
    %cst_32 = arith.constant dense<0.000000e+00> : vector<16x32xf32>
    %76 = tpu.matmul %74, %75, %cst_32 {dimension_numbers = #tpu.dot_dimension_numbers<[1], [0], [0], [1], [0, 0, 1, 1], [], []>} : vector<16x32xbf16>, vector<32x32xbf16>, vector<16x32xf32> -> vector<16x32xf32>
    %77 = arith.addf %73, %76 : vector<16x32xf32>
    %78 = vector.extract_strided_slice %72 {offsets = [16, 0], sizes = [16, 32], strides = [1, 1]} : vector<128x32xbf16> to vector<16x32xbf16>
    %c304 = arith.constant 304 : index
    %c0_33 = arith.constant 0 : index
    %79 = vector.load %arg2[%c304, %c0_33] : memref<560x128xbf16, #tpu.memory_space<vmem>>, vector<32x32xbf16>
    %cst_34 = arith.constant dense<0.000000e+00> : vector<16x32xf32>
    %80 = tpu.matmul %78, %79, %cst_34 {dimension_numbers = #tpu.dot_dimension_numbers<[1], [0], [0], [1], [0, 0, 1, 1], [], []>} : vector<16x32xbf16>, vector<32x32xbf16>, vector<16x32xf32> -> vector<16x32xf32>
    %81 = arith.addf %77, %80 : vector<16x32xf32>
    %82 = vector.extract_strided_slice %72 {offsets = [32, 0], sizes = [16, 32], strides = [1, 1]} : vector<128x32xbf16> to vector<16x32xbf16>
    %c336 = arith.constant 336 : index
    %c0_35 = arith.constant 0 : index
    %83 = vector.load %arg2[%c336, %c0_35] : memref<560x128xbf16, #tpu.memory_space<vmem>>, vector<32x32xbf16>
    %cst_36 = arith.constant dense<0.000000e+00> : vector<16x32xf32>
    %84 = tpu.matmul %82, %83, %cst_36 {dimension_numbers = #tpu.dot_dimension_numbers<[1], [0], [0], [1], [0, 0, 1, 1], [], []>} : vector<16x32xbf16>, vector<32x32xbf16>, vector<16x32xf32> -> vector<16x32xf32>
    %85 = arith.addf %81, %84 : vector<16x32xf32>
    %86 = vector.extract_strided_slice %72 {offsets = [48, 0], sizes = [16, 32], strides = [1, 1]} : vector<128x32xbf16> to vector<16x32xbf16>
    %c368 = arith.constant 368 : index
    %c0_37 = arith.constant 0 : index
    %87 = vector.load %arg2[%c368, %c0_37] : memref<560x128xbf16, #tpu.memory_space<vmem>>, vector<32x32xbf16>
    %cst_38 = arith.constant dense<0.000000e+00> : vector<16x32xf32>
    %88 = tpu.matmul %86, %87, %cst_38 {dimension_numbers = #tpu.dot_dimension_numbers<[1], [0], [0], [1], [0, 0, 1, 1], [], []>} : vector<16x32xbf16>, vector<32x32xbf16>, vector<16x32xf32> -> vector<16x32xf32>
    %89 = arith.addf %85, %88 : vector<16x32xf32>
    %90 = vector.extract_strided_slice %72 {offsets = [64, 0], sizes = [16, 32], strides = [1, 1]} : vector<128x32xbf16> to vector<16x32xbf16>
    %c400 = arith.constant 400 : index
    %c0_39 = arith.constant 0 : index
    %91 = vector.load %arg2[%c400, %c0_39] : memref<560x128xbf16, #tpu.memory_space<vmem>>, vector<32x32xbf16>
    %cst_40 = arith.constant dense<0.000000e+00> : vector<16x32xf32>
    %92 = tpu.matmul %90, %91, %cst_40 {dimension_numbers = #tpu.dot_dimension_numbers<[1], [0], [0], [1], [0, 0, 1, 1], [], []>} : vector<16x32xbf16>, vector<32x32xbf16>, vector<16x32xf32> -> vector<16x32xf32>
    %93 = arith.addf %89, %92 : vector<16x32xf32>
    %94 = vector.extract_strided_slice %72 {offsets = [80, 0], sizes = [16, 32], strides = [1, 1]} : vector<128x32xbf16> to vector<16x32xbf16>
    %c432 = arith.constant 432 : index
    %c0_41 = arith.constant 0 : index
    %95 = vector.load %arg2[%c432, %c0_41] : memref<560x128xbf16, #tpu.memory_space<vmem>>, vector<32x32xbf16>
    %cst_42 = arith.constant dense<0.000000e+00> : vector<16x32xf32>
    %96 = tpu.matmul %94, %95, %cst_42 {dimension_numbers = #tpu.dot_dimension_numbers<[1], [0], [0], [1], [0, 0, 1, 1], [], []>} : vector<16x32xbf16>, vector<32x32xbf16>, vector<16x32xf32> -> vector<16x32xf32>
    %97 = arith.addf %93, %96 : vector<16x32xf32>
    %98 = vector.extract_strided_slice %72 {offsets = [96, 0], sizes = [16, 32], strides = [1, 1]} : vector<128x32xbf16> to vector<16x32xbf16>
    %c464 = arith.constant 464 : index
    %c0_43 = arith.constant 0 : index
    %99 = vector.load %arg2[%c464, %c0_43] : memref<560x128xbf16, #tpu.memory_space<vmem>>, vector<32x32xbf16>
    %cst_44 = arith.constant dense<0.000000e+00> : vector<16x32xf32>
    %100 = tpu.matmul %98, %99, %cst_44 {dimension_numbers = #tpu.dot_dimension_numbers<[1], [0], [0], [1], [0, 0, 1, 1], [], []>} : vector<16x32xbf16>, vector<32x32xbf16>, vector<16x32xf32> -> vector<16x32xf32>
    %101 = arith.addf %97, %100 : vector<16x32xf32>
    %102 = vector.extract_strided_slice %72 {offsets = [112, 0], sizes = [16, 32], strides = [1, 1]} : vector<128x32xbf16> to vector<16x32xbf16>
    %c496 = arith.constant 496 : index
    %c0_45 = arith.constant 0 : index
    %103 = vector.load %arg2[%c496, %c0_45] : memref<560x128xbf16, #tpu.memory_space<vmem>>, vector<32x32xbf16>
    %cst_46 = arith.constant dense<0.000000e+00> : vector<16x32xf32>
    %104 = tpu.matmul %102, %103, %cst_46 {dimension_numbers = #tpu.dot_dimension_numbers<[1], [0], [0], [1], [0, 0, 1, 1], [], []>} : vector<16x32xbf16>, vector<32x32xbf16>, vector<16x32xf32> -> vector<16x32xf32>
    %105 = arith.addf %101, %104 : vector<16x32xf32>
    %c5 = arith.constant 5 : index
    %c0_47 = arith.constant 0 : index
    %106 = vector.load %arg3[%c5, %c0_47] : memref<8x128xf32, #tpu.memory_space<vmem>>, vector<1x32xf32>
    %107 = vector.broadcast %106 : vector<1x32xf32> to vector<16x32xf32>
    %108 = arith.addf %105, %107 : vector<16x32xf32>
    %cst_48 = arith.constant 0.000000e+00 : f32
    %109 = vector.broadcast %cst_48 : f32 to vector<16x32xf32>
    %110 = arith.maximumf %108, %109 : vector<16x32xf32>
    %111 = arith.truncf %110 : vector<16x32xf32> to vector<16x32xbf16>
    %c528 = arith.constant 528 : index
    %c0_49 = arith.constant 0 : index
    %112 = vector.load %arg2[%c528, %c0_49] : memref<560x128xbf16, #tpu.memory_space<vmem>>, vector<32x128xbf16>
    %cst_50 = arith.constant dense<0.000000e+00> : vector<16x128xf32>
    %113 = tpu.matmul %111, %112, %cst_50 {dimension_numbers = #tpu.dot_dimension_numbers<[1], [0], [0], [1], [0, 0, 1, 1], [], []>} : vector<16x32xbf16>, vector<32x128xbf16>, vector<16x128xf32> -> vector<16x128xf32>
    %c6 = arith.constant 6 : index
    %c0_51 = arith.constant 0 : index
    %114 = vector.load %arg3[%c6, %c0_51] : memref<8x128xf32, #tpu.memory_space<vmem>>, vector<1x128xf32>
    %115 = vector.broadcast %114 : vector<1x128xf32> to vector<16x128xf32>
    %116 = arith.addf %113, %115 : vector<16x128xf32>
    %c0_52 = arith.constant 0 : index
    %c0_53 = arith.constant 0 : index
    %117 = vector.load %arg4[%c0_52, %c0_53] : memref<16x128xf32, #tpu.memory_space<vmem>>, vector<16x128xf32>
    tpu.vector_store %arg4[%c0_52, %c0_53], %116 {strides = array<i32>} : memref<16x128xf32, #tpu.memory_space<vmem>>, vector<16x128xf32>,
    return
  }
  func.func @transform_0(%arg0: i32) -> (i32, i32, i32, i32) {
    %c0_i32 = arith.constant 0 : i32
    %c0_i32_0 = arith.constant 0 : i32
    %c0_i32_1 = arith.constant 0 : i32
    %c0_i32_2 = arith.constant 0 : i32
    return %c0_i32, %c0_i32_0, %arg0, %c0_i32_1 : i32, i32, i32, i32
  }
  func.func @transform_1(%arg0: i32) -> (i32, i32) {
    %c0_i32 = arith.constant 0 : i32
    %c0_i32_0 = arith.constant 0 : i32
    %c0_i32_1 = arith.constant 0 : i32
    return %c0_i32, %c0_i32_0 : i32, i32
  }
  func.func @transform_2(%arg0: i32) -> (i32, i32) {
    %c0_i32 = arith.constant 0 : i32
    %c0_i32_0 = arith.constant 0 : i32
    %c0_i32_1 = arith.constant 0 : i32
    return %c0_i32, %c0_i32_0 : i32, i32
  }
  func.func @transform_3(%arg0: i32) -> (i32, i32) {
    %c0_i32 = arith.constant 0 : i32
    %c0_i32_0 = arith.constant 0 : i32
    return %arg0, %c0_i32 : i32, i32
  }
}

</mosaic_0001>

<bundles_post_ra>
// kernel: tpu_custom_call.1
= control target key start
LH: loop header
LB: loop body
LE: loop exit
PB: predicated region body
PF: predicated region fallthrough
CT: control target
= control target key end

     0   :  { %8 = vsyncpa [#allocation3], 0  ;;  %s3393_s0 = inlined_call_operand.hbm [shape: bf16[3,8,32,32], index: 0, kind: input, shape index: {}]   ;;  %s3394_s1 = inlined_call_operand.hbm [shape: bf16[560,128], index: 1, kind: input, shape index: {}]   ;;  %s3395_s2 = inlined_call_operand.hbm [shape: f32[8,128], index: 2, kind: input, shape index: {}]   ;;  %s3396_s3 = inlined_call_operand.hbm [shape: f32[32,128], index: 3, kind: output, shape index: {}]  }
   0x1   :  { %10 = vsyncpa [#allocation3 + $0x1], 0 }
   0x2   :  { %11 = vsyncpa [#allocation6], 0 }
   0x3   :  { %12 = vsyncpa [#allocation4], 0 }
   0x4   :  { %14 = vsyncpa [#allocation4 + $0x1], 0  ;;  %s2513_s12 = smov 0   ;;  %s2515_s13 = smov 0  }
   0x5   :  { %s2517_s14 = smov 0   ;;  %s2519_s15 = smov 0  }
   0x6 LB: > { %s2534_s16 = sadd.s32 4294967295, %s2475_s15   ;;  %s1878_s17 = sadd.s32 4294967294, %s2475_s15   ;;  %s2475_s15 = sphi %s2519_s15, %s3469_s15   ;;  %s2471_s14 = sphi %s2517_s14, %s3468_s14   ;;  %s2467_s13 = sphi %s2515_s13, %s3467_s13   ;;  %s2463_s12 = sphi %s2513_s12, %s3466_s12  }
   0x7   : > { %s2538_s18 = sadd.s32 1, %s2475_s15   ;;  %s27_s19 = sadd.s32 1, %s2471_s14 }
   0x8   : > { %s24_s20 = ssub.s32 %s2475_s15, %s2538_s18  ;;  %p34_p0 = scmp.ne.s32.totalorder %s2471_s14, %s2467_s13 }
   0x9   : > { %p25_p1 = scmp.eq.s32.totalorder %s24_s20, 0  ;;  %p35_p2 = scmp.eq.s32.totalorder %s2475_s15, 0 }
   0xa   : > { %p40_p3 = scmp.ne.s32.totalorder %s2467_s13, %s2463_s12  ;;  %p41_p4 = scmp.eq.s32.totalorder %s2534_s16, 0 }
   0xb   : > { %s2550_s21 = scalar_select %p25_p1, %s2471_s14, %s27_s19  }
   0xc   : > { %p2552_p5 = por %p35_p2, %p34_p0  ;;  %p2558_p6 = por %p41_p4, %p40_p3 }
   0xd   : > { %p106_p7 = scmp.eq.s32.totalorder %s2534_s16, 1  ;;  %p112_p8 = scmp.eq.s32.totalorder %s1878_s17, 1 }
   0xe   : > { %p1879_p9 = scmp.ge.s32.totalorder %s2475_s15, 1  ;;  %p119_p10 = scmp.lt.s32.totalorder %s2475_s15, 3 }
   0xf   : > { %p2565_p11 = por %p106_p7, %p34_p0  ;;  %p2569_p12 = por %p112_p8, %p40_p3 }
  0x10   : > { %p2573_p13 = pnand %p1879_p9, %p119_p10  ;;  %s130_s29 = sshll.u32 %s3394_s1, 4  ;;  %s131_s29 = int_to_ptr.hbm [resolvable:$true] %s130_s29 }
  0x11   : > { %s2477_s30 = smov [#allocation5]   ;;  %s145_s7 = sshll.u32 %s3395_s2, 4  ;;  %s146_s7 = int_to_ptr.hbm [resolvable:$true] %s145_s7 }
  0x12   : > { %p2253_p1 = pneg %p2573_p13  ;;  %s132_s4 = sshll.u32 %s2477_s30, 4  ;;  %s133_s4 = int_to_ptr.vmem [resolvable:$true] %s132_s4 }
  0x13   : > { %s2478_s8 = smov 64   ;;  %s2479_s9 = smov 4  }
  0x14   : > { %p2254_p0 = pnand %p2253_p1, %p41_p4  ;;  %s2480_s10 = smov [#allocation7]  }
  0x15   : > { %s147_s11 = sshll.u32 %s2480_s10, 4  ;;  %p1882_p2 = scmp.ge.s32.totalorder %s2475_s15, 2  ;;  %s148_s11 = int_to_ptr.vmem [resolvable:$true] %s147_s11 }
  0x16   : > { %2256 = dma.hbm_to_vmem [thread:$0]  (!%p2254_p0), %s131_s29, 4480, %s133_s4, [#allocation6], %s2478_s8, %s2478_s8, %s2479_s9  }
  0x17   : > { %2259 = dma.hbm_to_vmem [thread:$0]  (!%p2254_p0), %s146_s7, 128, %s148_s11, [#allocation6]  }
  0x18   : > { %154 = sbr.rel (%p1882_p2) target bundleno = 43 (0x2b), region = 24 }
  0x1d   : > { %s158_s17 = sand.u32 1, %s2471_s14   ;;  %s2075_s19 = sshll.u32 %s2475_s15, 3 }
  0x1e   : > { %s2232_s20 = smul.u32 192, %s158_s17  ;;  %s167_s29 = scalar_lea.hbm %s3393_s0, %s2075_s19 }
  0x1f   : > { %s180_s30 = sshll.u32 %s167_s29, 4  ;;  %s2481_s8 = smov 256   ;;  %s181_s30 = int_to_ptr.hbm [resolvable:$true] %s180_s30 }
  0x20   : > { %s2238_s4 = scalar_select %p2552_p5, [#allocation0], [#allocation11] }
  0x21   : > { %s162_s5 = scalar_lea.vmem [#allocation2], %s2232_s20  ;;  %2239 = sst [smem:[#allocation10]] (%p2552_p5), %s2481_s8 }
  0x22   : > { %s182_s6 = sshll.u32 %s162_s5, 4  ;;  %s172_s7 = sld [smem:[%s2238_s4]]   ;;  %s183_s6 = int_to_ptr.vmem [resolvable:$true] %s182_s6 }
  0x23   : > { %s2482_s9 = smov 128   ;;  %s2483_s10 = smov 2  }
  0x24   : > { %2240 = sst [smem:[#allocation10 + $0x1]] (%p2552_p5), %s2482_s9  ;;  %s2484_s11 = smov 64  }
  0x25   : > { %2241 = sst [smem:[#allocation10 + $0x2]] (%p2552_p5), %s2483_s10  ;;  %s2485_s20 = smov 4  }
  0x26   : > { %2242 = sst [smem:[#allocation10 + $0x3]] (%p2552_p5), %s2484_s11  ;;  %s159_s28 = scalar_lea.sflag [#allocation3], %s158_s17 }
  0x27   : > { %2243 = sst [smem:[#allocation10 + $0x4]] (%p2552_p5), %s2484_s11  ;;  %s2486_s29 = smov [#allocation9]  }
  0x28   : > { %s1885_s19 = sshll.u32 %s172_s7, 26  ;;  %2244 = sst [smem:[#allocation10 + $0x5]] (%p2552_p5), %s2485_s20 }
  0x29   : > { %s1886_s27 = sadd.s32 134217728, %s1885_s19 }
  0x2a   : > { %2245 = dma.general (%p2552_p5), %s181_s30, 3072, %s183_s6, %s159_s28, %s2486_s29, [#allocation10], %s1886_s27, 0  }
  0x2b PF: > { %207 = sbr.rel (%p2573_p13) target bundleno = 1655 (0x677), region = 32  ;;  %s2614_s4 = sand.u32 (!%p2573_p13), 1, %s2467_s13  }
  0x2c   : > { %s2233_s5 = smul.u32 (!%p2573_p13), 192, %s2614_s4  ;;  %s210_s7 = scalar_lea.sflag (!%p2573_p13), [#allocation3], %s2614_s4 }
  0x2e   : > { %s2618_s8 = scalar_lea.vmem (!%p2573_p13), [#allocation2], %s2233_s5 }
  0x30   : > { %2450 = dma.done.wait (%p2558_p6), %s210_s7, 3072  }
  0x31   : > { %2452 = vsyncadd (%p2558_p6), %s210_s7, 4294964224 }
  0x32   : > { %2454 = dma.done.wait (%p41_p4), [#allocation6], 4608  }
  0x33   : > { %2456 = vsyncadd (%p41_p4), [#allocation6], 4294962688  ;;  %v2487_v0 = vmov 8.0   ;;  %v2077_v1 = vld [vmem:[#allocation5 + $0x8] sm:$0xff]  ;;  %v2629_v2 = vld [vmem:[%s2618_s8] sm:$0xff]   ;;  %vm346_vm0 = vcmask 261120  }
  0x34   : > { %2327 = vrcp.f32 %v2487_v0  ;;  %v2114_v4 = vunpack.c.l.bf16 %v2629_v2  ;;  %v2635_v5 = vld [vmem:[%s2618_s8 + $0x8] sm:$0xff]   ;;  %v2638_v6 = vld [vmem:[%s2618_s8 + $0x10] sm:$0xff]   ;;  %v2641_v7 = vld [vmem:[%s2618_s8 + $0x18] sm:$0xff]   ;;  %486 = vmatpush.bf16.msra.mxu0 %v2077_v1  ;;  %v2115_v12 = vunpack.c.h.bf16 %v2629_v2  ;;  %vm523_vm2 = vcmask 130048   ;;  %s2489_s22 = smov 32   ;;  %s2490_s23 = smov 64  }
  0x35   : > { %v2076_v8 = vld [vmem:[#allocation5] sm:$0xff]  ;;  %v3427_v9 = vunpack.c.l.bf16 %v2635_v5  ;;  %v3409_v10 = vunpack.c.l.bf16 %v2638_v6  ;;  %v3404_v13 = vunpack.c.l.bf16 %v2641_v7  ;;  %v2651_v14 = vld [vmem:[%s2618_s8 + $0x28] sm:$0xff]   ;;  %v2119_v15 = vunpack.c.h.bf16 %v2635_v5  ;;  %v2656_v17 = vld [vmem:[%s2618_s8 + $0x30] sm:$0xff]   ;;  %s1890_s26 = sshll.u32 %s2614_s4, 4  ;;  %s2111_s17 = sshll.u32 %s2534_s16, 4 }
  0x36   : > { %v2646_v11 = vld [vmem:[%s2618_s8 + $0x20] sm:$0xff]   ;;  %v3411_v16 = vunpack.c.h.bf16 %v2638_v6  ;;  %v2659_v18 = vld [vmem:[%s2618_s8 + $0x38] sm:$0xff]   ;;  %v3407_v20 = vunpack.c.h.bf16 %v2641_v7  ;;  %v347_v22 = vsel %vm346_vm0, %v2114_v4, 0.0  ;;  %v2134_v25 = vunpack.c.l.bf16 %v2651_v14  ;;  %v2699_v40 = vld [vmem:[%s2618_s8 + $0x48] sm:$0xff]   ;;  %s246_s30 = scalar_lea.vmem [#allocation8], %s1890_s26  ;;  %s1782_s10 = scalar_lea.hbm %s3396_s3, %s2111_s17 }
  0x37   : > { %v2130_v21 = vunpack.c.l.bf16 %v2646_v11  ;;  %v348_v23 = vsel %vm346_vm0, %v3427_v9, 0.0  ;;  %v3400_v24 = vunpack.c.h.bf16 %v2646_v11  ;;  %v350_v27 = vsel %vm346_vm0, %v3409_v10, 0.0  ;;  %v2691_v36 = vld [vmem:[%s2618_s8 + $0x40] sm:$0xff]   ;;  %v2702_v41 = vld [vmem:[%s2618_s8 + $0x50] sm:$0xff]   ;;  %v2718_v50 = vld [vmem:[%s2618_s8 + $0x58] sm:$0xff]   ;;  %s1783_s11 = sshll.u32 %s246_s30, 4  ;;  %s1784_s11 = int_to_ptr.vmem [resolvable:$true] %s1783_s11 }
  0x38   : > { %487 = vmatpush.bf16.msra.mxu0 %v2076_v8  ;;  %v349_v26 = vadd.f32 %v348_v23, %v347_v22  ;;  %v2138_v28 = vunpack.c.l.bf16 %v2656_v17  ;;  %v3425_v29 = vunpack.c.l.bf16 %v2659_v18  ;;  %v352_v30 = vsel %vm346_vm0, %v3404_v13, 0.0  ;;  %v2731_v59 = vld [vmem:[%s2618_s8 + $0x60] sm:$0xff]   ;;  %s1785_s19 = sshll.u32 %s1782_s10, 4  ;;  %s1771_s20 = scalar_lea.sflag [#allocation4], %s2614_s4  ;;  %s1786_s19 = int_to_ptr.hbm [resolvable:$true] %s1785_s19 }
  0x39   : > { %v362_v31 = vsel %vm346_vm0, %v2115_v12, 0.0  ;;  %v3399_v32 = vunpack.c.h.bf16 %v2651_v14  ;;  %v363_v34 = vsel %vm346_vm0, %v2119_v15, 0.0  ;;  %v365_v35 = vsel %vm346_vm0, %v3411_v16, 0.0  ;;  %s2419_s27 = sshra.s32 %s1786_s19, 4  ;;  %s2425_s5 = scalar_lea.hbm %s3396_s3, 32  ;;  %s2420_s27 = int_to_ptr.hbm [resolvable:$true] %s2419_s27 }
  0x3a   : > { %v2631_v3 = vpop.eup %2327  ;;  %v351_v33 = vadd.f32 %v350_v27, %v349_v26  ;;  %v3398_v37 = vunpack.c.h.bf16 %v2656_v17  ;;  %v354_v38 = vsel %vm346_vm0, %v2130_v21, 0.0  ;;  %v364_v39 = vadd.f32 %v363_v34, %v362_v31  ;;  %v2750_v31 = vld [vmem:[%s2618_s8 + $0x70] sm:$0xff]   ;;  %s2421_s28 = scalar_lea.hbm %s2420_s27, 16  ;;  %p2426_p6 = scmp.lt.s32.totalorder %s2420_s27, %s3396_s3 }
  0x3b   : > { %v438_v19 = vmul.f32 8.0, %v2631_v3  ;;  %vm442_vm1 = vweird.f32 %v2631_v3  ;;  %v3397_v42 = vunpack.c.h.bf16 %v2659_v18  ;;  %v367_v44 = vsel %vm346_vm0, %v3407_v20, 0.0  ;;  %p2422_p3 = scmp.ne.s32.totalorder %s2420_s27, %s2421_s28  ;;  %p2427_p7 = scmp.lt.s32.totalorder %s2425_s5, %s2421_s28 }
  0x3c   : > { %v353_v43 = vadd.f32 %v352_v30, %v351_v33  ;;  %v356_v46 = vsel %vm346_vm0, %v2134_v25, 0.0  ;;  %v358_v47 = vsel %vm346_vm0, %v2138_v28, 0.0  ;;  %v360_v48 = vsel %vm346_vm0, %v3425_v29, 0.0  ;;  %v2747_v30 = vld [vmem:[%s2618_s8 + $0x68] sm:$0xff]  }
  0x3d   : > { %v439_v45 = vsub.f32 1.0, %v438_v19  ;;  %v366_v49 = vadd.f32 %v365_v35, %v364_v39  ;;  %v369_v52 = vsel %vm346_vm0, %v3400_v24, 0.0  ;;  %v371_v53 = vsel %vm346_vm0, %v3399_v32, 0.0  ;;  %p2423_p4 = pnand %p2422_p3, %p2565_p11  ;;  %p2428_p8 = por %p2427_p7, %p2426_p6 }
  0x3e   : > { %v355_v51 = vadd.f32 %v354_v38, %v353_v43  ;;  %v2146_v56 = vunpack.c.l.bf16 %v2691_v36  ;;  %v3426_v57 = vunpack.c.l.bf16 %v2699_v40  ;;  %v3408_v58 = vunpack.c.l.bf16 %v2702_v41 }
  0x3f   : > { %v440_v54 = vmul.f32 %v2631_v3, %v439_v45  ;;  %v368_v55 = vadd.f32 %v367_v44, %v366_v49  ;;  %v373_v61 = vsel %vm346_vm0, %v3398_v37, 0.0  ;;  %v375_v62 = vsel %vm346_vm0, %v3397_v42, 0.0  ;;  %p2424_p5 = pneg %p2423_p4 }
  0x40   : > { %v357_v60 = vadd.f32 %v356_v46, %v355_v51  ;;  %v2147_v1 = vunpack.c.h.bf16 %v2691_v36  ;;  %v2151_v8 = vunpack.c.h.bf16 %v2699_v40  ;;  %v3401_v19 = vunpack.c.l.bf16 %v2718_v50 }
  0x41   : > { %v441_v63 = vadd.f32 %v2631_v3, %v440_v54  ;;  %v370_v0 = vadd.f32 %v369_v52, %v368_v55  ;;  %v3410_v23 = vunpack.c.h.bf16 %v2702_v41  ;;  %v3405_v26 = vunpack.c.h.bf16 %v2718_v50  ;;  %p2429_p9 = pnand %p2428_p8, %p2424_p5 }
  0x42   : > { %v359_v22 = vadd.f32 %v358_v47, %v357_v60  ;;  %v2162_v27 = vunpack.c.l.bf16 %v2731_v59  ;;  %v377_v34 = vsel %vm346_vm0, %v2146_v56, 0.0  ;;  %v378_v35 = vsel %vm346_vm0, %v3426_v57, 0.0 }
  0x43   : > { %v372_v33 = vadd.f32 %v371_v53, %v370_v0  ;;  %v380_v38 = vsel %vm346_vm0, %v3408_v58, 0.0  ;;  %v2764_v43 = vsel %vm442_vm1, %v2631_v3, %v441_v63  ;;  %v3403_v44 = vunpack.c.h.bf16 %v2731_v59 }
  0x44   : > { %v361_v39 = vadd.f32 %v360_v48, %v359_v22  ;;  %v379_v45 = vadd.f32 %v378_v35, %v377_v34  ;;  %v2166_v47 = vunpack.c.l.bf16 %v2747_v30  ;;  %v2170_v49 = vunpack.c.l.bf16 %v2750_v31  ;;  %v2773_v48 = vld [vmem:[%s2618_s8 + $0x78] sm:$0xff]   ;;  %v2794_v35 = vld [vmem:[%s2618_s8 + $0x80] sm:$0xff]  }
  0x45   : > { %v374_v46 = vadd.f32 %v373_v61, %v372_v33  ;;  %v382_v51 = vsel %vm346_vm0, %v3401_v19, 0.0  ;;  %v384_v3 = vsel %vm346_vm0, %v2162_v27, 0.0  ;;  %v392_v53 = vsel %vm346_vm0, %v2147_v1, 0.0  ;;  %v2824_v19 = vld [vmem:[%s2618_s8 + $0xa0] sm:$0xff]  }
  0x46   : > { %v381_v52 = vadd.f32 %v380_v38, %v379_v45  ;;  %v393_v54 = vsel %vm346_vm0, %v2151_v8, 0.0  ;;  %v444_v60 = vmul.f32 %v2764_v43, %v361_v39  ;;  %v395_v63 = vsel %vm346_vm0, %v3410_v23, 0.0 }
  0x47   : > { %v376_v55 = vadd.f32 %v375_v62, %v374_v46  ;;  %v394_v61 = vadd.f32 %v393_v54, %v392_v53  ;;  %v3402_v0 = vunpack.c.h.bf16 %v2747_v30  ;;  %v3406_v22 = vunpack.c.h.bf16 %v2750_v31  ;;  %v2797_v62 = vld [vmem:[%s2618_s8 + $0x88] sm:$0xff]   ;;  %v2805_v53 = vld [vmem:[%s2618_s8 + $0x90] sm:$0xff]  }
  0x48   : > { %v383_v33 = vadd.f32 %v382_v51, %v381_v52  ;;  %v397_v34 = vsel %vm346_vm0, %v3405_v26, 0.0  ;;  %v3416_v39 = vunpack.c.l.bf16 %v2773_v48  ;;  %v386_v45 = vsel %vm346_vm0, %v2166_v47, 0.0  ;;  %v2839_v26 = vld [vmem:[%s2618_s8 + $0xa8] sm:$0xff]  }
  0x49   : > { %v445_v38 = vmul.f32 %v2764_v43, %v376_v55  ;;  %v396_v46 = vadd.f32 %v395_v63, %v394_v61  ;;  %v388_v52 = vsel %vm346_vm0, %v2170_v49, 0.0  ;;  %v399_v54 = vsel %vm346_vm0, %v3403_v44, 0.0  ;;  %v2814_v55 = vld [vmem:[%s2618_s8 + $0x98] sm:$0xff]  }
  0x4a   : > { %v385_v51 = vadd.f32 %v384_v3, %v383_v33  ;;  %v2178_v32 = vunpack.c.l.bf16 %v2794_v35  ;;  %v3415_v24 = vunpack.c.l.bf16 %v2797_v62  ;;  %v3412_v61 = vunpack.c.h.bf16 %v2773_v48 }
  0x4b   : > { %v450_v42 = vpack.c.bf16 %v445_v38, %v444_v60  ;;  %v398_v37 = vadd.f32 %v397_v34, %v396_v46  ;;  %v401_v63 = vsel %vm346_vm0, %v3402_v0, 0.0  ;;  %v3414_v33 = vunpack.c.l.bf16 %v2805_v53 }
  0x4c   : > { %v387_v3 = vadd.f32 %v386_v45, %v385_v51  ;;  %v390_v60 = vsel %vm346_vm0, %v3416_v39, 0.0  ;;  %v403_v38 = vsel %vm346_vm0, %v3406_v22, 0.0  ;;  %v3413_v45 = vunpack.c.l.bf16 %v2814_v55 }
  0x4d   : > { %1899 = vmatmul.msk.bf16.vlgmr.msra.gmra.mxu0 %vm346_vm0, %v450_v42  ;;  %v400_v34 = vadd.f32 %v399_v54, %v398_v37  ;;  %v2179_v51 = vunpack.c.h.bf16 %v2794_v35  ;;  %v3424_v0 = vunpack.c.h.bf16 %v2797_v62  ;;  %v3417_v44 = vunpack.c.h.bf16 %v2805_v53 }
  0x4e   : > { %v389_v46 = vadd.f32 %v388_v52, %v387_v3  ;;  %v2194_v42 = vunpack.c.l.bf16 %v2824_v19  ;;  %v407_v37 = vsel %vm346_vm0, %v2178_v32, 0.0  ;;  %v408_v52 = vsel %vm346_vm0, %v3415_v24, 0.0 }
  0x4f   : > { %v402_v13 = vadd.f32 %v401_v63, %v400_v34  ;;  %v405_v54 = vsel %vm346_vm0, %v3412_v61, 0.0  ;;  %v409_v3 = vadd.f32 %v408_v52, %v407_v37  ;;  %v410_v63 = vsel %vm346_vm0, %v3414_v33, 0.0  ;;  %v2863_v61 = vld [vmem:[%s2618_s8 + $0xb0] sm:$0xff]  }
  0x50   : > { %v391_v34 = vadd.f32 %v390_v60, %v389_v46  ;;  %v3418_v20 = vunpack.c.h.bf16 %v2814_v55  ;;  %v412_v58 = vsel %vm346_vm0, %v3413_v45, 0.0  ;;  %v3419_v10 = vunpack.c.h.bf16 %v2824_v19 }
  0x51   : > { %v404_v22 = vadd.f32 %v403_v38, %v402_v13  ;;  %v2198_v23 = vunpack.c.l.bf16 %v2839_v26  ;;  %v411_v16 = vadd.f32 %v410_v63, %v409_v3  ;;  %v422_v37 = vsel %vm346_vm0, %v2179_v51, 0.0 }
  0x52   : > { %v414_v13 = vsel %vm346_vm0, %v2194_v42, 0.0  ;;  %v423_v60 = vsel %vm346_vm0, %v3424_v0, 0.0  ;;  %v425_v38 = vsel %vm346_vm0, %v3417_v44, 0.0  ;;  %v446_v63 = vmul.f32 %v2764_v43, %v391_v34 }
  0x53   : > { %v406_v52 = vadd.f32 %v405_v54, %v404_v22  ;;  %v413_v46 = vadd.f32 %v412_v58, %v411_v16  ;;  %v424_v3 = vadd.f32 %v423_v60, %v422_v37  ;;  %v3420_v54 = vunpack.c.h.bf16 %v2839_v26  ;;  %v2886_v58 = vld [vmem:[%s2618_s8 + $0xb8] sm:$0xff]  }
  0x54   : > { %v427_v45 = vsel %vm346_vm0, %v3418_v20, 0.0  ;;  %v3428_v33 = vunpack.c.l.bf16 %v2863_v61  ;;  %v416_v39 = vsel %vm346_vm0, %v2198_v23, 0.0  ;;  %v3421_v16 = vunpack.c.h.bf16 %v2863_v61 }
  0x55   : > { %v447_v22 = vmul.f32 %v2764_v43, %v406_v52  ;;  %v415_v24 = vadd.f32 %v414_v13, %v413_v46  ;;  %v426_v44 = vadd.f32 %v425_v38, %v424_v3  ;;  %v429_v34 = vsel %vm346_vm0, %v3419_v10, 0.0 }
  0x56   : > { %v431_v13 = vsel %vm346_vm0, %v3420_v54, 0.0  ;;  %v3422_v46 = vunpack.c.l.bf16 %v2886_v58  ;;  %v3423_v20 = vunpack.c.h.bf16 %v2886_v58  ;;  %v418_v38 = vsel %vm346_vm0, %v3428_v33, 0.0 }
  0x57   : > { %v428_v37 = vadd.f32 %v427_v45, %v426_v44  ;;  %v451_v52 = vpack.c.bf16 %v447_v22, %v446_v63  ;;  %v417_v60 = vadd.f32 %v416_v39, %v415_v24  ;;  %v433_v10 = vsel %vm346_vm0, %v3421_v16, 0.0 }
  0x58   : > { %v420_v39 = vsel %vm346_vm0, %v3422_v46, 0.0  ;;  %v435_v63 = vsel %vm346_vm0, %v3423_v20, 0.0  ;;  %vm557_vm3 = vcmask 7168   ;;  %vm990_vm4 = vcmask 523264  }
  0x59   : > { %v430_v3 = vadd.f32 %v429_v34, %v428_v37  ;;  %v419_v24 = vadd.f32 %v418_v38, %v417_v60  ;;  %vm1057_vm5 = vcmask 785408  }
  0x5b   : > { %v432_v44 = vadd.f32 %v431_v13, %v430_v3  ;;  %v421_v22 = vadd.f32 %v420_v39, %v419_v24  ;;  %v2320_v13 = vld [vmem:[#allocation7] ss:$0 sm:$0xff] }
  0x5d   : > { %1900 = vmatmul.msk.bf16.gmra.mxu0 %vm346_vm0, %v451_v52  ;;  %v434_v45 = vadd.f32 %v433_v10, %v432_v44  ;;  %v448_v34 = vmul.f32 %v2764_v43, %v421_v22  ;;  %v2078_v52 = vld [vmem:[#allocation5 + $0x10] sm:$0xff] }
  0x5e   : > { %540 = vmatpush.bf16.msra.mxu1 %v2078_v52  ;;  %2231 = vmatpush.bf16.msra.mxu3 %v2078_v52 }
  0x5f   : > { %v436_v54 = vadd.f32 %v435_v63, %v434_v45 }
  0x61   : > { %v449_v37 = vmul.f32 %v2764_v43, %v436_v54 }
  0x63   : > { %v452_v16 = vpack.c.bf16 %v449_v37, %v448_v34 }
  0x6d   : > { %1901 = vmatmul.msk.bf16.gmra.mxu0 %vm346_vm0, %v452_v16 }
  0xca   : > { %v489_v60 = vpop.f32.mrf.mxu0 }
  0xcb   : > { %v490_v38 = vadd.f32 %v2320_v13, %v489_v60 }
  0xcd   : > { %v504_v44 = vmax.f32 %v490_v38, 0.0 }
  0xd2   : > { %v491_v10 = vpop.f32.mrf.mxu0 }
  0xd3   : > { %v492_v3 = vadd.f32 %v2320_v13, %v491_v10 }
  0xd5   : > { %v505_v46 = vmax.f32 %v492_v3, 0.0 }
  0xd7   : > { %v510_v24 = vpack.c.bf16 %v505_v46, %v504_v44 }
  0xd9   : > { %1906 = vmatmul.msk.bf16.vlgmr.msra.gmra.mxu1 %vm523_vm2, %v510_v24  ;;  %v2321_v24 = vld [vmem:[#allocation7 + $0x1] ss:$0 sm:$0xff] }
  0xda   : > { %v494_v39 = vpop.f32.mrf.mxu0 }
  0xdb   : > { %v495_v45 = vadd.f32 %v2320_v13, %v494_v39 }
  0xdd   : > { %v506_v63 = vmax.f32 %v495_v45, 0.0 }
  0xe2   : > { %v496_v43 = vpop.f32.mrf.mxu0 }
  0xe3   : > { %v497_v54 = vadd.f32 %v2320_v13, %v496_v43 }
  0xe5   : > { %v507_v16 = vmax.f32 %v497_v54, 0.0 }
  0xe7   : > { %v511_v22 = vpack.c.bf16 %v507_v16, %v506_v63  ;;  %v2488_v63 = vmov 0  }
  0xe8   : > { %2319 = vset.pattern.permute.xlu2 %v2488_v63  ;;  %2318 = vset.pattern.permute.xlu1 %v2488_v63 }
  0xe9   : > { %1907 = vmatmul.msk.bf16.gmra.mxu1 %vm523_vm2, %v511_v22  ;;  %2317 = vset.pattern.permute.xlu0 %v2488_v63 }
  0xea   : > { %v499_v34 = vpop.f32.mrf.mxu0 }
  0xeb   : > { %v500_v37 = vadd.f32 %v2320_v13, %v499_v34 }
  0xed   : > { %v508_v10 = vmax.f32 %v500_v37, 0.0 }
  0xf2   : > { %v501_v52 = vpop.f32.mrf.mxu0 }
  0xf3   : > { %v502_v60 = vadd.f32 %v2320_v13, %v501_v52 }
  0xf5   : > { %v509_v38 = vmax.f32 %v502_v60, 0.0 }
  0xf7   : > { %v512_v3 = vpack.c.bf16 %v509_v38, %v508_v10 }
  0xf9   : > { %1908 = vmatmul.msk.bf16.vlgmr.msra.gmra.mxu3 %vm523_vm2, %v512_v3 }
 0x156   : > { %v542_v46 = vpop.f32.mrf.mxu1 }
 0x157   : > { %v543_v20 = vadd.f32 %v2321_v24, %v542_v46 }
 0x159   : > { %v558_v13 = vsel %vm557_vm3, %v543_v20, -inf }
 0x15e   : > { %v544_v44 = vpop.f32.mrf.mxu1 }
 0x15f   : > { %v545_v60 = vadd.f32 %v2321_v24, %v544_v44 }
 0x161   : > { %v563_v9 = vsel %vm557_vm3, %v545_v60, -inf }
 0x166   : > { %v547_v39 = vpop.f32.mrf.mxu1 }
 0x167   : > { %v548_v43 = vadd.f32 %v2321_v24, %v547_v39 }
 0x169   : > { %v559_v34 = vsel %vm557_vm3, %v548_v43, -inf }
 0x16e   : > { %v549_v37 = vpop.f32.mrf.mxu1 }
 0x16f   : > { %v550_v39 = vadd.f32 %v2321_v24, %v549_v37 }
 0x17c   : > { %v552_v45 = vpop.f32.mrf.mxu3 }
 0x17d   : > { %v553_v54 = vadd.f32 %v2321_v24, %v552_v45 }
 0x17f   : > { %v560_v16 = vsel %vm557_vm3, %v553_v54, -inf }
 0x180   : > { %v561_v22 = vmax.f32 %v558_v13, %v560_v16  ;;  %v564_v16 = vsel %vm557_vm3, %v550_v39, -inf }
 0x182   : > { %v562_v52 = vmax.f32 %v561_v22, %v559_v34 }
 0x184   : > { %v568_v10 = vsub.f32 %v543_v20, %v562_v52  ;;  %v570_v38 = vsub.f32 %v548_v43, %v562_v52  ;;  %v572_v3 = vsub.f32 %v553_v54, %v562_v52  ;;  %v554_v46 = vpop.f32.mrf.mxu3 }
 0x185   : > { %v555_v45 = vadd.f32 %v2321_v24, %v554_v46 }
 0x186   : > { %v574_v0 = vmul.f32 1.442695, %v568_v10  ;;  %v578_v29 = vmul.f32 1.442695, %v570_v38  ;;  %v582_v57 = vmul.f32 1.442695, %v572_v3 }
 0x187   : > { %v565_v33 = vsel %vm557_vm3, %v555_v45, -inf }
 0x188   : > { %2329 = vpow2.f32 %v574_v0  ;;  %v566_v13 = vmax.f32 %v563_v9, %v565_v33 }
 0x189   : > { %2331 = vpow2.f32 %v578_v29 }
 0x18a   : > { %2333 = vpow2.f32 %v582_v57  ;;  %v567_v44 = vmax.f32 %v566_v13, %v564_v16 }
 0x18c   : > { %v569_v20 = vsub.f32 %v545_v60, %v567_v44  ;;  %v571_v43 = vsub.f32 %v550_v39, %v567_v44  ;;  %v573_v54 = vsub.f32 %v555_v45, %v567_v44 }
 0x18e   : > { %v2330_v22 = vpop.eup %2329  ;;  %v576_v34 = vmul.f32 1.442695, %v569_v20  ;;  %v580_v24 = vmul.f32 1.442695, %v571_v43  ;;  %v584_v37 = vmul.f32 1.442695, %v573_v54 }
 0x18f   : > { %v2332_v52 = vpop.eup %2331  ;;  %v586_v10 = vsel %vm557_vm3, %v2330_v22, 0.0 }
 0x190   : > { %v2334_v38 = vpop.eup %2333  ;;  %v587_v3 = vsel %vm557_vm3, %v2332_v52, 0.0  ;;  %2335 = vpow2.f32 %v576_v34 }
 0x191   : > { %v588_v9 = vadd.f32 %v587_v3, %v586_v10  ;;  %2337 = vpow2.f32 %v580_v24  ;;  %v589_v29 = vsel %vm557_vm3, %v2334_v38, 0.0  ;;  %v2080_v3 = vld [vmem:[#allocation5 + $0x20] sm:$0xff] }
 0x192   : > { %2339 = vpow2.f32 %v584_v37  ;;  %818 = vmatpush.bf16.msra.mxu2 %v2080_v3 }
 0x193   : > { %v590_v57 = vadd.f32 %v589_v29, %v588_v9  ;;  %v2079_v9 = vld [vmem:[#allocation5 + $0x18] sm:$0xff] }
 0x195   : > { %2341 = vrcp.f32 %v590_v57 }
 0x196   : > { %v2336_v0 = vpop.eup %2335  ;;  %819 = vmatpush.bf16.msra.mxu2 %v2079_v9 }
 0x197   : > { %v2338_v33 = vpop.eup %2337  ;;  %v591_v60 = vsel %vm557_vm3, %v2336_v0, 0.0 }
 0x198   : > { %v2340_v46 = vpop.eup %2339  ;;  %v592_v39 = vsel %vm557_vm3, %v2338_v33, 0.0 }
 0x199   : > { %v593_v45 = vadd.f32 %v592_v39, %v591_v60  ;;  %v594_v13 = vsel %vm557_vm3, %v2340_v46, 0.0 }
 0x19b   : > { %v2342_v16 = vpop.eup %2341  ;;  %v595_v44 = vadd.f32 %v594_v13, %v593_v45 }
 0x19c   : > { %v602_v20 = vmul.f32 %v2342_v16, %v2334_v38  ;;  %v600_v43 = vmul.f32 %v2342_v16, %v2332_v52  ;;  %v598_v54 = vmul.f32 %v2342_v16, %v2330_v22 }
 0x19d   : > { %2343 = vrcp.f32 %v595_v44 }
 0x19e   : > { %626 = vperm.xlu2 %2319, %v602_v20   ;;  %616 = vperm.xlu1 %2318, %v600_v43  }
 0x19f   : > { %606 = vperm.xlu0 %2317, %v598_v54  }
 0x1a3   : > { %v2344_v34 = vpop.eup %2343 }
 0x1a4   : > { %v603_v24 = vmul.f32 %v2344_v34, %v2340_v46  ;;  %v601_v37 = vmul.f32 %v2344_v34, %v2338_v33  ;;  %v599_v10 = vmul.f32 %v2344_v34, %v2336_v0 }
 0x1a6   : > { %631 = vperm.xlu2 %2319, %v603_v24   ;;  %621 = vperm.xlu1 %2318, %v601_v37  }
 0x1a7   : > { %611 = vperm.xlu0 %2317, %v599_v10  }
 0x1f8   : > { %v2930_v29 = vpop.permute.xlu2 %626 }
 0x1f9   : > { %v666_v13 = vmul.f32 %v2178_v32, %v2930_v29  ;;  %v676_v35 = vmul.f32 %v2198_v23, %v2930_v29 }
 0x200   : > { %v2942_v0 = vpop.permute.xlu2 %631 }
 0x201   : > { %v667_v16 = vmul.f32 %v2179_v51, %v2942_v0  ;;  %v685_v51 = vsel %vm346_vm0, %v666_v13, 0.0 }
 0x210   : > { %v2932_v38 = vpop.permute.xlu1 %616 }
 0x211   : > { %v2934_v22 = vpop.permute.xlu0 %606  ;;  %v650_v57 = vmul.f32 %v2146_v56, %v2932_v38  ;;  %v658_v39 = vmul.f32 %v2162_v27, %v2932_v38  ;;  %v660_v2 = vmul.f32 %v2166_v47, %v2932_v38 }
 0x212   : > { %v634_v52 = vmul.f32 %v2114_v4, %v2934_v22  ;;  %v642_v46 = vmul.f32 %v2130_v21, %v2934_v22  ;;  %v674_v21 = vmul.f32 %v2194_v42, %v2930_v29  ;;  %v644_v36 = vmul.f32 %v2134_v25, %v2934_v22 }
 0x213   : > { %v683_v60 = vsel %vm346_vm0, %v650_v57, 0.0  ;;  %v723_v20 = vsel %vm346_vm0, %v658_v39, 0.0  ;;  %v690_v25 = vsel %vm346_vm0, %v667_v16, 0.0  ;;  %v733_v47 = vsel %vm346_vm0, %v660_v2, 0.0 }
 0x214   : > { %v682_v33 = vsel %vm346_vm0, %v634_v52, 0.0  ;;  %v722_v32 = vsel %vm346_vm0, %v642_v46, 0.0  ;;  %v725_v54 = vsel %vm346_vm0, %v674_v21, 0.0  ;;  %v732_v37 = vsel %vm346_vm0, %v644_v36, 0.0 }
 0x215   : > { %v684_v44 = vadd.f32 %v683_v60, %v682_v33  ;;  %v724_v43 = vadd.f32 %v723_v20, %v722_v32  ;;  %v734_v52 = vadd.f32 %v733_v47, %v732_v37  ;;  %v735_v57 = vsel %vm346_vm0, %v676_v35, 0.0 }
 0x216   : > { %v646_v33 = vmul.f32 %v2138_v28, %v2934_v22  ;;  %v662_v60 = vmul.f32 %v2170_v49, %v2932_v38  ;;  %v3437_v28 = vunpack.c.l.bf16 %v2659_v18  ;;  %v3439_v20 = vunpack.c.l.bf16 %v2773_v48 }
 0x217   : > { %v686_v34 = vadd.f32 %v685_v51, %v684_v44  ;;  %v2989_v10 = vadd.f32 %v725_v54, %v724_v43  ;;  %v3014_v21 = vadd.f32 %v735_v57, %v734_v52 }
 0x218   : > { %v2952_v45 = vpop.permute.xlu1 %621  ;;  %v742_v49 = vsel %vm346_vm0, %v646_v33, 0.0  ;;  %v743_v16 = vsel %vm346_vm0, %v662_v60, 0.0  ;;  %v664_v2 = vmul.f32 %v3439_v20, %v2932_v38 }
 0x219   : > { %v2954_v4 = vpop.permute.xlu0 %611  ;;  %v651_v56 = vmul.f32 %v2147_v1, %v2952_v45  ;;  %v653_v9 = vmul.f32 %v2151_v8, %v2952_v45  ;;  %v3435_v8 = vunpack.c.l.bf16 %v2635_v5  ;;  %v744_v5 = vadd.f32 %v743_v16, %v742_v49 }
 0x21a   : > { %v635_v27 = vmul.f32 %v2115_v12, %v2954_v4  ;;  %v637_v23 = vmul.f32 %v2119_v15, %v2954_v4  ;;  %v3434_v15 = vunpack.c.l.bf16 %v2863_v61 }
 0x21b   : > { %v688_v1 = vsel %vm346_vm0, %v651_v56, 0.0  ;;  %v636_v39 = vmul.f32 %v3435_v8, %v2934_v22  ;;  %v3436_v56 = vunpack.c.l.bf16 %v2699_v40  ;;  %v698_v36 = vsel %vm346_vm0, %v653_v9, 0.0 }
 0x21c   : > { %v687_v12 = vsel %vm346_vm0, %v635_v27, 0.0  ;;  %v678_v46 = vmul.f32 %v3434_v15, %v2930_v29  ;;  %v648_v27 = vmul.f32 %v3437_v28, %v2934_v22  ;;  %v697_v44 = vsel %vm346_vm0, %v637_v23, 0.0 }
 0x21d   : > { %v689_v42 = vadd.f32 %v688_v1, %v687_v12  ;;  %v652_v13 = vmul.f32 %v3436_v56, %v2932_v38  ;;  %v3438_v1 = vunpack.c.h.bf16 %v2797_v62  ;;  %v3440_v12 = vunpack.c.l.bf16 %v2886_v58 }
 0x21e   : > { %v745_v32 = vsel %vm346_vm0, %v678_v46, 0.0  ;;  %v692_v35 = vsel %vm346_vm0, %v636_v39, 0.0  ;;  %v752_v43 = vsel %vm346_vm0, %v648_v27, 0.0  ;;  %v699_v54 = vadd.f32 %v698_v36, %v697_v44 }
 0x21f   : > { %v691_v24 = vadd.f32 %v690_v25, %v689_v42  ;;  %v669_v40 = vmul.f32 %v3438_v1, %v2942_v0  ;;  %v680_v42 = vmul.f32 %v3440_v12, %v2930_v29  ;;  %v693_v51 = vsel %vm346_vm0, %v652_v13, 0.0 }
 0x220   : > { %v3035_v25 = vadd.f32 %v745_v32, %v744_v5  ;;  %v3442_v46 = vunpack.c.h.bf16 %v2638_v6  ;;  %v3444_v56 = vunpack.c.l.bf16 %v2638_v6  ;;  %v3445_v28 = vunpack.c.l.bf16 %v2702_v41 }
 0x221   : > { %v762_v3 = vpack.c.bf16 %v691_v24, %v686_v34  ;;  %v753_v34 = vsel %vm346_vm0, %v664_v2, 0.0  ;;  %v3441_v24 = vunpack.c.l.bf16 %v2797_v62  ;;  %v755_v23 = vsel %vm346_vm0, %v680_v42, 0.0 }
 0x222   : > { %v754_v47 = vadd.f32 %v753_v34, %v752_v43  ;;  %v700_v9 = vsel %vm346_vm0, %v669_v40, 0.0  ;;  %v639_v8 = vmul.f32 %v3442_v46, %v2954_v4  ;;  %v3443_v62 = vunpack.c.h.bf16 %v2702_v41 }
 0x223   : > { %1917 = vmatmul.msk.bf16.vlgmr.msra.gmra.mxu2 %vm346_vm0, %v762_v3  ;;  %v668_v37 = vmul.f32 %v3441_v24, %v2930_v29  ;;  %v694_v3 = vadd.f32 %v693_v51, %v692_v35  ;;  %v701_v57 = vadd.f32 %v700_v9, %v699_v54  ;;  %v638_v13 = vmul.f32 %v3444_v56, %v2934_v22 }
 0x224   : > { %v3044_v52 = vadd.f32 %v755_v23, %v754_v47  ;;  %v655_v39 = vmul.f32 %v3443_v62, %v2952_v45  ;;  %v654_v27 = vmul.f32 %v3445_v28, %v2932_v38  ;;  %v707_v49 = vsel %vm346_vm0, %v639_v8, 0.0 }
 0x225   : > { %v695_v33 = vsel %vm346_vm0, %v668_v37, 0.0  ;;  %v3446_v44 = vunpack.c.h.bf16 %v2805_v53  ;;  %v702_v5 = vsel %vm346_vm0, %v638_v13, 0.0  ;;  %v3447_v6 = vunpack.c.l.bf16 %v2805_v53 }
 0x226   : > { %v696_v60 = vadd.f32 %v695_v33, %v694_v3  ;;  %v708_v16 = vsel %vm346_vm0, %v655_v39, 0.0  ;;  %v703_v1 = vsel %vm346_vm0, %v654_v27, 0.0  ;;  %v3448_v51 = vunpack.c.h.bf16 %v2641_v7 }
 0x227   : > { %v671_v36 = vmul.f32 %v3446_v44, %v2942_v0  ;;  %v709_v40 = vadd.f32 %v708_v16, %v707_v49  ;;  %v670_v32 = vmul.f32 %v3447_v6, %v2930_v29  ;;  %v704_v20 = vadd.f32 %v703_v1, %v702_v5 }
 0x228   : > { %v763_v15 = vpack.c.bf16 %v701_v57, %v696_v60  ;;  %v641_v43 = vmul.f32 %v3448_v51, %v2954_v4  ;;  %v3449_v54 = vunpack.c.h.bf16 %v2718_v50  ;;  %v3450_v53 = vunpack.c.l.bf16 %v2641_v7 }
 0x229   : > { %v710_v41 = vsel %vm346_vm0, %v671_v36, 0.0  ;;  %v705_v12 = vsel %vm346_vm0, %v670_v32, 0.0  ;;  %v3451_v37 = vunpack.c.l.bf16 %v2718_v50  ;;  %v3452_v9 = vunpack.c.h.bf16 %v2814_v55 }
 0x22a   : > { %v711_v2 = vadd.f32 %v710_v41, %v709_v40  ;;  %v706_v42 = vadd.f32 %v705_v12, %v704_v20  ;;  %v657_v34 = vmul.f32 %v3449_v54, %v2952_v45  ;;  %v640_v24 = vmul.f32 %v3450_v53, %v2934_v22 }
 0x22b   : > { %v656_v47 = vmul.f32 %v3451_v37, %v2932_v38  ;;  %v717_v3 = vsel %vm346_vm0, %v641_v43, 0.0  ;;  %v673_v57 = vmul.f32 %v3452_v9, %v2942_v0  ;;  %v3453_v7 = vunpack.c.l.bf16 %v2814_v55 }
 0x22c   : > { %v764_v35 = vpack.c.bf16 %v711_v2, %v706_v42  ;;  %v718_v23 = vsel %vm346_vm0, %v657_v34, 0.0  ;;  %v712_v33 = vsel %vm346_vm0, %v640_v24, 0.0  ;;  %v3454_v56 = vunpack.c.h.bf16 %v2646_v11 }
 0x22d   : > { %v713_v60 = vsel %vm346_vm0, %v656_v47, 0.0  ;;  %v672_v22 = vmul.f32 %v3453_v7, %v2930_v29  ;;  %v720_v50 = vsel %vm346_vm0, %v673_v57, 0.0  ;;  %v3455_v28 = vunpack.c.h.bf16 %v2731_v59 }
 0x22e   : > { %v714_v46 = vadd.f32 %v713_v60, %v712_v33  ;;  %v643_v13 = vmul.f32 %v3454_v56, %v2954_v4  ;;  %v3456_v49 = vunpack.c.h.bf16 %v2824_v19  ;;  %v3457_v59 = vunpack.c.h.bf16 %v2651_v14 }
 0x22f   : > { %v715_v8 = vsel %vm346_vm0, %v672_v22, 0.0  ;;  %v659_v27 = vmul.f32 %v3455_v28, %v2952_v45  ;;  %v3458_v40 = vunpack.c.h.bf16 %v2747_v30  ;;  %v3459_v20 = vunpack.c.h.bf16 %v2839_v26 }
 0x230   : > { %v716_v62 = vadd.f32 %v715_v8, %v714_v46  ;;  %v727_v55 = vsel %vm346_vm0, %v643_v13, 0.0  ;;  %v675_v16 = vmul.f32 %v3456_v49, %v2942_v0  ;;  %v645_v1 = vmul.f32 %v3457_v59, %v2954_v4 }
 0x231   : > { %v728_v29 = vsel %vm346_vm0, %v659_v27, 0.0  ;;  %v661_v6 = vmul.f32 %v3458_v40, %v2952_v45  ;;  %v677_v41 = vmul.f32 %v3459_v20, %v2942_v0  ;;  %v3460_v30 = vunpack.c.h.bf16 %v2656_v17 }
 0x232   : > { %v729_v44 = vadd.f32 %v728_v29, %v727_v55  ;;  %v730_v36 = vsel %vm346_vm0, %v675_v16, 0.0  ;;  %v737_v32 = vsel %vm346_vm0, %v645_v1, 0.0  ;;  %v3462_v54 = vunpack.c.h.bf16 %v2863_v61 }
 0x233   : > { %1918 = vmatmul.msk.bf16.gmra.mxu2 %vm346_vm0, %v763_v15  ;;  %v719_v15 = vadd.f32 %v718_v23, %v717_v3  ;;  %v738_v19 = vsel %vm346_vm0, %v661_v6, 0.0  ;;  %v647_v42 = vmul.f32 %v3460_v30, %v2954_v4  ;;  %v3464_v47 = vunpack.c.h.bf16 %v2773_v48  ;;  %v3154_v48 = vld [vmem:[#allocation7 + $0x2] ss:$0 sm:$0xff] }
 0x234   : > { %v731_v5 = vadd.f32 %v730_v36, %v729_v44  ;;  %v739_v2 = vadd.f32 %v738_v19, %v737_v32  ;;  %v679_v34 = vmul.f32 %v3462_v54, %v2942_v0  ;;  %v3465_v9 = vunpack.c.h.bf16 %v2886_v58 }
 0x235   : > { %v721_v38 = vadd.f32 %v720_v50, %v719_v15  ;;  %v747_v43 = vsel %vm346_vm0, %v647_v42, 0.0  ;;  %v665_v3 = vmul.f32 %v3464_v47, %v2952_v45 }
 0x236   : > { %v766_v11 = vpack.c.bf16 %v731_v5, %v2989_v10  ;;  %v740_v10 = vsel %vm346_vm0, %v677_v41, 0.0  ;;  %v681_v57 = vmul.f32 %v3465_v9, %v2942_v0 }
 0x237   : > { %v765_v39 = vpack.c.bf16 %v721_v38, %v716_v62  ;;  %v741_v12 = vadd.f32 %v740_v10, %v739_v2  ;;  %v758_v61 = vsel %vm346_vm0, %v665_v3, 0.0 }
 0x239   : > { %v767_v14 = vpack.c.bf16 %v741_v12, %v3014_v21  ;;  %v750_v21 = vsel %vm346_vm0, %v679_v34, 0.0 }
 0x243   : > { %1919 = vmatmul.msk.bf16.gmra.mxu2 %vm346_vm0, %v764_v35  ;;  %v3461_v35 = vunpack.c.h.bf16 %v2750_v31  ;;  %v3463_v31 = vunpack.c.h.bf16 %v2659_v18 }
 0x245   : > { %v663_v51 = vmul.f32 %v3461_v35, %v2952_v45  ;;  %v649_v37 = vmul.f32 %v3463_v31, %v2954_v4 }
 0x247   : > { %v748_v26 = vsel %vm346_vm0, %v663_v51, 0.0  ;;  %v757_v23 = vsel %vm346_vm0, %v649_v37, 0.0 }
 0x248   : > { %v749_v53 = vadd.f32 %v748_v26, %v747_v43  ;;  %v759_v33 = vadd.f32 %v758_v61, %v757_v23 }
 0x24a   : > { %v751_v24 = vadd.f32 %v750_v21, %v749_v53 }
 0x24c   : > { %v768_v17 = vpack.c.bf16 %v751_v24, %v3035_v25  ;;  %v760_v25 = vsel %vm346_vm0, %v681_v57, 0.0 }
 0x24d   : > { %v761_v60 = vadd.f32 %v760_v25, %v759_v33 }
 0x24f   : > { %v769_v18 = vpack.c.bf16 %v761_v60, %v3044_v52 }
 0x253   : > { %1920 = vmatmul.msk.bf16.gmra.mxu2 %vm346_vm0, %v765_v39 }
 0x263   : > { %1921 = vmatmul.msk.bf16.gmra.mxu2 %vm346_vm0, %v766_v11 }
 0x273   : > { %1922 = vmatmul.msk.bf16.gmra.mxu2 %vm346_vm0, %v767_v14 }
 0x283   : > { %1923 = vmatmul.msk.bf16.gmra.mxu2 %vm346_vm0, %v768_v17 }
 0x293   : > { %1924 = vmatmul.msk.bf16.gmra.mxu2 %vm346_vm0, %v769_v18 }
 0x2a6   : > { %v821_v45 = vpop.f32.mrf.mxu2 }
 0x2a7   : > { %v822_v4 = vadd.f32 %v3154_v48, %v821_v45 }
 0x2a9   : > { %v861_v15 = vmax.f32 %v822_v4, 0.0 }
 0x2ab   : > { %v877_v46 = vpack.c.bf16 %v861_v15, %v861_v15 }
 0x2ad   : > { %v907_v50 = vunpack.c.l.b16 %v877_v46 }
 0x2ae   : > { %v823_v7 = vpop.f32.mrf.mxu2 }
 0x2af   : > { %v824_v22 = vadd.f32 %v3154_v48, %v823_v7  ;;  %v2086_v7 = vld [vmem:[#allocation5 + $0x50] sm:$0xff] }
 0x2b0   : > { %1076 = vmatpush.bf16.msrb.mxu3 %v2086_v7 }
 0x2b1   : > { %v862_v58 = vmax.f32 %v824_v22, 0.0 }
 0x2b3   : > { %v878_v0 = vpack.c.bf16 %v862_v58, %v862_v58 }
 0x2b5   : > { %v908_v38 = vunpack.c.l.b16 %v878_v0  ;;  %v2085_v0 = vld [vmem:[#allocation5 + $0x48] sm:$0xff] }
 0x2b6   : > { %v826_v8 = vpop.f32.mrf.mxu2  ;;  %1077 = vmatpush.bf16.msrb.mxu3 %v2085_v0 }
 0x2b7   : > { %v3158_v62 = vpack.c.b16 %v908_v38, %v907_v50  ;;  %v827_v52 = vadd.f32 %v3154_v48, %v826_v8  ;;  %v2084_v50 = vld [vmem:[#allocation5 + $0x40] sm:$0xff] }
 0x2b9   : > { %933 = vrot.lane.b32.xlu0 %v3158_v62, %s2489_s22  ;;  %v863_v39 = vmax.f32 %v827_v52, 0.0 }
 0x2ba   : > { %1078 = vmatpush.bf16.msrb.mxu3 %v2084_v50 }
 0x2bb   : > { %v879_v28 = vpack.c.bf16 %v863_v39, %v863_v39  ;;  %v2083_v39 = vld [vmem:[#allocation5 + $0x38] sm:$0xff] }
 0x2bd   : > { %v909_v29 = vunpack.c.l.b16 %v879_v28 }
 0x2be   : > { %v828_v56 = vpop.f32.mrf.mxu2  ;;  %1079 = vmatpush.bf16.msrb.mxu3 %v2083_v39 }
 0x2bf   : > { %v829_v13 = vadd.f32 %v3154_v48, %v828_v56 }
 0x2c1   : > { %v864_v27 = vmax.f32 %v829_v13, 0.0 }
 0x2c3   : > { %v880_v55 = vpack.c.bf16 %v864_v27, %v864_v27  ;;  %v2082_v27 = vld [vmem:[#allocation5 + $0x30] sm:$0xff] }
 0x2c4   : > { %1080 = vmatpush.bf16.msrb.mxu3 %v2082_v27 }
 0x2c5   : > { %v910_v49 = vunpack.c.l.b16 %v880_v55 }
 0x2c6   : > { %v831_v16 = vpop.f32.mrf.mxu2 }
 0x2c7   : > { %v3164_v44 = vpack.c.b16 %v910_v49, %v909_v29  ;;  %v832_v36 = vadd.f32 %v3154_v48, %v831_v16 }
 0x2c9   : > { %935 = vrot.lane.b32.xlu2 %v3164_v44, %s2489_s22  ;;  %950 = vrot.lane.b32.xlu1 %v3164_v44, %s2490_s23  ;;  %v865_v5 = vmax.f32 %v832_v36, 0.0  ;;  %v2081_v36 = vld [vmem:[#allocation5 + $0x28] sm:$0xff] }
 0x2ca   : > { %1081 = vmatpush.bf16.msrb.mxu3 %v2081_v36 }
 0x2cb   : > { %v881_v1 = vpack.c.bf16 %v865_v5, %v865_v5 }
 0x2cd   : > { %v911_v32 = vunpack.c.l.b16 %v881_v1 }
 0x2ce   : > { %v833_v11 = vpop.f32.mrf.mxu2 }
 0x2cf   : > { %v834_v59 = vadd.f32 %v3154_v48, %v833_v11 }
 0x2d1   : > { %v866_v40 = vmax.f32 %v834_v59, 0.0 }
 0x2d3   : > { %v882_v6 = vpack.c.bf16 %v866_v40, %v866_v40 }
 0x2d5   : > { %v912_v19 = vunpack.c.l.b16 %v882_v6 }
 0x2d6   : > { %v836_v20 = vpop.f32.mrf.mxu2 }
 0x2d7   : > { %v3172_v41 = vpack.c.b16 %v912_v19, %v911_v32  ;;  %v837_v2 = vadd.f32 %v3154_v48, %v836_v20 }
 0x2d9   : > { %937 = vrot.lane.b32.xlu1 %v3172_v41, %s2489_s22  ;;  %952 = vrot.lane.b32.xlu0 %v3172_v41, %s2490_s23  ;;  %v867_v10 = vmax.f32 %v837_v2, 0.0 }
 0x2db   : > { %v883_v30 = vpack.c.bf16 %v867_v10, %v867_v10 }
 0x2dd   : > { %v913_v51 = vunpack.c.l.b16 %v883_v30 }
 0x2de   : > { %v838_v12 = vpop.f32.mrf.mxu2 }
 0x2df   : > { %v839_v14 = vadd.f32 %v3154_v48, %v838_v12 }
 0x2e1   : > { %v868_v42 = vmax.f32 %v839_v14, 0.0 }
 0x2e3   : > { %v884_v35 = vpack.c.bf16 %v868_v42, %v868_v42 }
 0x2e5   : > { %v914_v43 = vunpack.c.l.b16 %v884_v35 }
 0x2e6   : > { %v841_v26 = vpop.f32.mrf.mxu2 }
 0x2e7   : > { %v3180_v54 = vpack.c.b16 %v914_v43, %v913_v51  ;;  %v842_v34 = vadd.f32 %v3154_v48, %v841_v26 }
 0x2e9   : > { %954 = vrot.lane.b32.xlu2 %v3180_v54, %s2490_s23  ;;  %939 = vrot.lane.b32.xlu0 %v3180_v54, %s2489_s22  ;;  %v869_v53 = vmax.f32 %v842_v34, 0.0 }
 0x2eb   : > { %v885_v17 = vpack.c.bf16 %v869_v53, %v869_v53 }
 0x2ed   : > { %v915_v47 = vunpack.c.l.b16 %v885_v17 }
 0x2ee   : > { %v843_v21 = vpop.f32.mrf.mxu2 }
 0x2ef   : > { %v844_v24 = vadd.f32 %v3154_v48, %v843_v21 }
 0x2f1   : > { %v870_v31 = vmax.f32 %v844_v24, 0.0 }
 0x2f3   : > { %v886_v37 = vpack.c.bf16 %v870_v31, %v870_v31 }
 0x2f5   : > { %v916_v3 = vunpack.c.l.b16 %v886_v37 }
 0x2f6   : > { %v846_v23 = vpop.f32.mrf.mxu2 }
 0x2f7   : > { %v3188_v61 = vpack.c.b16 %v916_v3, %v915_v47  ;;  %v847_v9 = vadd.f32 %v3154_v48, %v846_v23 }
 0x2f9   : > { %941 = vrot.lane.b32.xlu2 %v3188_v61, %s2489_s22  ;;  %956 = vrot.lane.b32.xlu1 %v3188_v61, %s2490_s23  ;;  %v871_v57 = vmax.f32 %v847_v9, 0.0 }
 0x2fb   : > { %v887_v60 = vpack.c.bf16 %v871_v57, %v871_v57 }
 0x2fd   : > { %v917_v4 = vunpack.c.l.b16 %v887_v60 }
 0x2fe   : > { %v848_v33 = vpop.f32.mrf.mxu2 }
 0x2ff   : > { %v849_v25 = vadd.f32 %v3154_v48, %v848_v33 }
 0x301   : > { %v872_v18 = vmax.f32 %v849_v25, 0.0 }
 0x303   : > { %v888_v45 = vpack.c.bf16 %v872_v18, %v872_v18 }
 0x305   : > { %v918_v15 = vunpack.c.l.b16 %v888_v45  ;;  %v3245_v45 = vld [vmem:[#allocation7 + $0x3] ss:$0 sm:$0xff] }
 0x306   : > { %v851_v22 = vpop.f32.mrf.mxu2 }
 0x307   : > { %v3196_v46 = vpack.c.b16 %v918_v15, %v917_v4  ;;  %v852_v58 = vadd.f32 %v3154_v48, %v851_v22 }
 0x309   : > { %943 = vrot.lane.b32.xlu1 %v3196_v46, %s2489_s22  ;;  %958 = vrot.lane.b32.xlu0 %v3196_v46, %s2490_s23  ;;  %v873_v38 = vmax.f32 %v852_v58, 0.0 }
 0x30b   : > { %v889_v56 = vpack.c.bf16 %v873_v38, %v873_v38 }
 0x30d   : > { %v919_v55 = vunpack.c.l.b16 %v889_v56 }
 0x30e   : > { %v853_v8 = vpop.f32.mrf.mxu2 }
 0x30f   : > { %v854_v52 = vadd.f32 %v3154_v48, %v853_v8 }
 0x311   : > { %v874_v13 = vmax.f32 %v854_v52, 0.0 }
 0x313   : > { %v890_v28 = vpack.c.bf16 %v874_v13, %v874_v13 }
 0x315   : > { %v920_v29 = vunpack.c.l.b16 %v890_v28 }
 0x316   : > { %v856_v49 = vpop.f32.mrf.mxu2 }
 0x317   : > { %v927_v16 = vpack.c.b16 %v920_v29, %v919_v55  ;;  %v857_v5 = vadd.f32 %v3154_v48, %v856_v49 }
 0x319   : > { %960 = vrot.lane.b32.xlu2 %v927_v16, %s2490_s23  ;;  %945 = vrot.lane.b32.xlu0 %v927_v16, %s2489_s22  ;;  %v875_v11 = vmax.f32 %v857_v5, 0.0 }
 0x31b   : > { %v891_v40 = vpack.c.bf16 %v875_v11, %v875_v11 }
 0x31d   : > { %v930_v19 = vunpack.c.l.b16 %v891_v40 }
 0x31e   : > { %v858_v59 = vpop.f32.mrf.mxu2 }
 0x31f   : > { %v859_v1 = vadd.f32 %v3154_v48, %v858_v59 }
 0x321   : > { %v876_v6 = vmax.f32 %v859_v1, 0.0  ;;  %964 = vrot.lane.b32.xlu0 %v2488_v63, %s2490_s23 }
 0x323   : > { %v892_v32 = vpack.c.bf16 %v876_v6, %v876_v6  ;;  %v936_v30 = vpop.permute.xlu2 %935 }
 0x324   : > { %v971_v63 = vsel %vm346_vm0, %v3158_v62, %v936_v30 }
 0x325   : > { %v931_v20 = vunpack.c.l.b16 %v892_v32 }
 0x327   : > { %v932_v2 = vpack.c.b16 %v931_v20, %v930_v19 }
 0x329   : > { %947 = vrot.lane.b32.xlu2 %v932_v2, %s2489_s22  ;;  %962 = vrot.lane.b32.xlu1 %v932_v2, %s2490_s23 }
 0x32b   : > { %v934_v10 = vpop.permute.xlu0 %933 }
 0x32c   : > { %v968_v12 = vsel %vm346_vm0, 0, %v934_v10 }
 0x33b   : > { %v951_v14 = vpop.permute.xlu1 %950 }
 0x33c   : > { %v992_v48 = vsel %vm990_vm4, %v968_v12, %v951_v14 }
 0x33d   : > { %1949 = vmatmul.msk.bf16.vlgmr.msrb.gmra.mxu3 %vm1057_vm5, %v992_v48 }
 0x343   : > { %v955_v26 = vpop.permute.xlu2 %954 }
 0x34b   : > { %v953_v42 = vpop.permute.xlu0 %952  ;;  %v938_v51 = vpop.permute.xlu1 %937 }
 0x34c   : > { %v994_v35 = vsel %vm990_vm4, %v971_v63, %v953_v42  ;;  %v974_v43 = vsel %vm346_vm0, %v3164_v44, %v938_v51 }
 0x34d   : > { %1950 = vmatmul.msk.bf16.gmra.mxu3 %vm1057_vm5, %v994_v35  ;;  %v996_v34 = vsel %vm990_vm4, %v974_v43, %v955_v26 }
 0x353   : > { %v942_v17 = vpop.permute.xlu2 %941 }
 0x354   : > { %v980_v31 = vsel %vm346_vm0, %v3180_v54, %v942_v17 }
 0x35b   : > { %v940_v53 = vpop.permute.xlu0 %939 }
 0x35c   : > { %v977_v21 = vsel %vm346_vm0, %v3172_v41, %v940_v53 }
 0x35d   : > { %1951 = vmatmul.msk.bf16.gmra.mxu3 %vm1057_vm5, %v996_v34 }
 0x36b   : > { %v957_v24 = vpop.permute.xlu1 %956 }
 0x36c   : > { %v998_v62 = vsel %vm990_vm4, %v977_v21, %v957_v24 }
 0x36d   : > { %1952 = vmatmul.msk.bf16.gmra.mxu3 %vm1057_vm5, %v998_v62 }
 0x373   : > { %v961_v23 = vpop.permute.xlu2 %960 }
 0x37b   : > { %v959_v37 = vpop.permute.xlu0 %958  ;;  %v944_v47 = vpop.permute.xlu1 %943 }
 0x37c   : > { %v1000_v44 = vsel %vm990_vm4, %v980_v31, %v959_v37  ;;  %v983_v3 = vsel %vm346_vm0, %v3188_v61, %v944_v47 }
 0x37d   : > { %1953 = vmatmul.msk.bf16.gmra.mxu3 %vm1057_vm5, %v1000_v44  ;;  %v1002_v41 = vsel %vm990_vm4, %v983_v3, %v961_v23 }
 0x383   : > { %v948_v25 = vpop.permute.xlu2 %947 }
 0x384   : > { %v989_v18 = vsel %vm346_vm0, %v927_v16, %v948_v25 }
 0x38b   : > { %v946_v9 = vpop.permute.xlu0 %945 }
 0x38c   : > { %v986_v57 = vsel %vm346_vm0, %v3196_v46, %v946_v9 }
 0x38d   : > { %1954 = vmatmul.msk.bf16.gmra.mxu3 %vm1057_vm5, %v1002_v41 }
 0x393   : > { %v3239_v60 = vpop.permute.xlu0 %964 }
 0x394   : > { %v1006_v61 = vsel %vm990_vm4, %v989_v18, %v3239_v60 }
 0x39b   : > { %v963_v33 = vpop.permute.xlu1 %962 }
 0x39c   : > { %v1004_v54 = vsel %vm990_vm4, %v986_v57, %v963_v33 }
 0x39d   : > { %1955 = vmatmul.msk.bf16.gmra.mxu3 %vm1057_vm5, %v1004_v54  ;;  %v2092_v54 = vld [vmem:[#allocation5 + $0x80] sm:$0xff] }
 0x39e   : > { %1331 = vmatpush.bf16.msrb.mxu1 %v2092_v54 }
 0x3ad   : > { %1956 = vmatmul.msk.bf16.gmra.mxu3 %vm1057_vm5, %v1006_v61  ;;  %v2091_v61 = vld [vmem:[#allocation5 + $0x78] sm:$0xff] }
 0x3ae   : > { %1332 = vmatpush.bf16.msrb.mxu1 %v2091_v61  ;;  %v2106_v61 = vld [vmem:[#allocation5 + $0xf0] sm:$0xff] }
 0x3af   : > { %1676 = vmatpush.bf16.msrb.mxu2 %v2106_v61 }
 0x3c0   : > { %v1083_v4 = vpop.f32.mrf.mxu3 }
 0x3c1   : > { %v1084_v15 = vadd.f32 %v3245_v45, %v1083_v4 }
 0x3c3   : > { %v1123_v7 = vmax.f32 %v1084_v15, 0.0 }
 0x3c5   : > { %v1139_v58 = vpack.c.bf16 %v1123_v7, %v1123_v7 }
 0x3c7   : > { %v1169_v38 = vunpack.c.l.b16 %v1139_v58  ;;  %v2090_v58 = vld [vmem:[#allocation5 + $0x70] sm:$0xff] }
 0x3c8   : > { %v1085_v22 = vpop.f32.mrf.mxu3  ;;  %1333 = vmatpush.bf16.msrb.mxu1 %v2090_v58 }
 0x3c9   : > { %v1086_v46 = vadd.f32 %v3245_v45, %v1085_v22 }
 0x3cb   : > { %v1124_v0 = vmax.f32 %v1086_v46, 0.0 }
 0x3cd   : > { %v1140_v50 = vpack.c.bf16 %v1124_v0, %v1124_v0 }
 0x3cf   : > { %v1170_v8 = vunpack.c.l.b16 %v1140_v50 }
 0x3d0   : > { %v1088_v52 = vpop.f32.mrf.mxu3 }
 0x3d1   : > { %v3249_v39 = vpack.c.b16 %v1170_v8, %v1169_v38  ;;  %v1089_v56 = vadd.f32 %v3245_v45, %v1088_v52  ;;  %v2089_v38 = vld [vmem:[#allocation5 + $0x68] sm:$0xff]  ;;  %v2088_v52 = vld [vmem:[#allocation5 + $0x60] sm:$0xff] }
 0x3d2   : > { %1334 = vmatpush.bf16.msrb.mxu1 %v2089_v38  ;;  %v2093_v38 = vld [vmem:[#allocation5 + $0x88] sm:$0xff] }
 0x3d3   : > { %1195 = vrot.lane.b32.xlu1 %v3249_v39, %s2489_s22  ;;  %v1125_v13 = vmax.f32 %v1089_v56, 0.0 }
 0x3d5   : > { %v1141_v55 = vpack.c.bf16 %v1125_v13, %v1125_v13 }
 0x3d6   : > { %1335 = vmatpush.bf16.msrb.mxu1 %v2088_v52 }
 0x3d7   : > { %v1171_v16 = vunpack.c.l.b16 %v1141_v55 }
 0x3d8   : > { %v1090_v28 = vpop.f32.mrf.mxu3 }
 0x3d9   : > { %v1091_v27 = vadd.f32 %v3245_v45, %v1090_v28 }
 0x3db   : > { %v1126_v29 = vmax.f32 %v1091_v27, 0.0  ;;  %v2087_v27 = vld [vmem:[#allocation5 + $0x58] sm:$0xff] }
 0x3dc   : > { %1336 = vmatpush.bf16.msrb.mxu1 %v2087_v27 }
 0x3dd   : > { %v1142_v49 = vpack.c.bf16 %v1126_v29, %v1126_v29 }
 0x3df   : > { %v1172_v36 = vunpack.c.l.b16 %v1142_v49 }
 0x3e0   : > { %v1093_v5 = vpop.f32.mrf.mxu3 }
 0x3e1   : > { %v3255_v11 = vpack.c.b16 %v1172_v36, %v1171_v16  ;;  %v1094_v59 = vadd.f32 %v3245_v45, %v1093_v5 }
 0x3e3   : > { %1197 = vrot.lane.b32.xlu0 %v3255_v11, %s2489_s22  ;;  %1211 = vrot.lane.b32.xlu2 %v3255_v11, %s2490_s23  ;;  %v1127_v1 = vmax.f32 %v1094_v59, 0.0 }
 0x3e5   : > { %v1143_v32 = vpack.c.bf16 %v1127_v1, %v1127_v1 }
 0x3e7   : > { %v1173_v2 = vunpack.c.l.b16 %v1143_v32 }
 0x3e8   : > { %v1095_v40 = vpop.f32.mrf.mxu3 }
 0x3e9   : > { %v1096_v6 = vadd.f32 %v3245_v45, %v1095_v40 }
 0x3eb   : > { %v1128_v19 = vmax.f32 %v1096_v6, 0.0 }
 0x3ed   : > { %v1144_v20 = vpack.c.bf16 %v1128_v19, %v1128_v19 }
 0x3ef   : > { %v1174_v10 = vunpack.c.l.b16 %v1144_v20 }
 0x3f0   : > { %v1098_v12 = vpop.f32.mrf.mxu3 }
 0x3f1   : > { %v3263_v14 = vpack.c.b16 %v1174_v10, %v1173_v2  ;;  %v1099_v48 = vadd.f32 %v3245_v45, %v1098_v12 }
 0x3f3   : > { %1213 = vrot.lane.b32.xlu1 %v3263_v14, %s2490_s23  ;;  %1199 = vrot.lane.b32.xlu2 %v3263_v14, %s2489_s22  ;;  %v1129_v30 = vmax.f32 %v1099_v48, 0.0 }
 0x3f5   : > { %v1145_v35 = vpack.c.bf16 %v1129_v30, %v1129_v30 }
 0x3f7   : > { %v1175_v26 = vunpack.c.l.b16 %v1145_v35 }
 0x3f8   : > { %v1100_v63 = vpop.f32.mrf.mxu3 }
 0x3f9   : > { %v1101_v42 = vadd.f32 %v3245_v45, %v1100_v63 }
 0x3fb   : > { %v1130_v51 = vmax.f32 %v1101_v42, 0.0 }
 0x3fd   : > { %v1146_v43 = vpack.c.bf16 %v1130_v51, %v1130_v51 }
 0x3ff   : > { %v1176_v34 = vunpack.c.l.b16 %v1146_v43 }
 0x400   : > { %v1103_v53 = vpop.f32.mrf.mxu3 }
 0x401   : > { %v3271_v21 = vpack.c.b16 %v1176_v34, %v1175_v26  ;;  %v1104_v24 = vadd.f32 %v3245_v45, %v1103_v53 }
 0x403   : > { %1201 = vrot.lane.b32.xlu1 %v3271_v21, %s2489_s22  ;;  %1215 = vrot.lane.b32.xlu0 %v3271_v21, %s2490_s23  ;;  %v1131_v62 = vmax.f32 %v1104_v24, 0.0 }
 0x405   : > { %v1147_v37 = vpack.c.bf16 %v1131_v62, %v1131_v62 }
 0x407   : > { %v1177_v3 = vunpack.c.l.b16 %v1147_v37 }
 0x408   : > { %v1105_v17 = vpop.f32.mrf.mxu3 }
 0x409   : > { %v1106_v31 = vadd.f32 %v3245_v45, %v1105_v17 }
 0x40b   : > { %v1132_v44 = vmax.f32 %v1106_v31, 0.0 }
 0x40d   : > { %v1148_v47 = vpack.c.bf16 %v1132_v44, %v1132_v44 }
 0x40f   : > { %v1178_v23 = vunpack.c.l.b16 %v1148_v47 }
 0x410   : > { %v1108_v41 = vpop.f32.mrf.mxu3 }
 0x411   : > { %v3279_v9 = vpack.c.b16 %v1178_v23, %v1177_v3  ;;  %v1109_v57 = vadd.f32 %v3245_v45, %v1108_v41 }
 0x413   : > { %1203 = vrot.lane.b32.xlu0 %v3279_v9, %s2489_s22  ;;  %1217 = vrot.lane.b32.xlu2 %v3279_v9, %s2490_s23  ;;  %v1133_v33 = vmax.f32 %v1109_v57, 0.0 }
 0x415   : > { %v1149_v4 = vpack.c.bf16 %v1133_v33, %v1133_v33  ;;  %v2096_v33 = vld [vmem:[#allocation5 + $0xa0] sm:$0xff] }
 0x416   : > { %1444 = vmatpush.bf16.msrb.mxu0 %v2096_v33 }
 0x417   : > { %v1179_v22 = vunpack.c.l.b16 %v1149_v4  ;;  %v2095_v4 = vld [vmem:[#allocation5 + $0x98] sm:$0xff] }
 0x418   : > { %v1110_v25 = vpop.f32.mrf.mxu3 }
 0x419   : > { %v1111_v18 = vadd.f32 %v3245_v45, %v1110_v25 }
 0x41a   : > { %1445 = vmatpush.bf16.msrb.mxu0 %v2095_v4  ;;  %v2103_v4 = vld [vmem:[#allocation5 + $0xd8] sm:$0xff] }
 0x41b   : > { %v1134_v15 = vmax.f32 %v1111_v18, 0.0 }
 0x41d   : > { %v1150_v7 = vpack.c.bf16 %v1134_v15, %v1134_v15 }
 0x41f   : > { %v1180_v46 = vunpack.c.l.b16 %v1150_v7 }
 0x420   : > { %v1113_v0 = vpop.f32.mrf.mxu3 }
 0x421   : > { %v3287_v50 = vpack.c.b16 %v1180_v46, %v1179_v22  ;;  %v1114_v8 = vadd.f32 %v3245_v45, %v1113_v0  ;;  %v2094_v46 = vld [vmem:[#allocation5 + $0x90] sm:$0xff] }
 0x422   : > { %1478 = vmatpush.bf16.msra.mxu0 %v2094_v46 }
 0x423   : > { %1219 = vrot.lane.b32.xlu1 %v3287_v50, %s2490_s23  ;;  %1205 = vrot.lane.b32.xlu2 %v3287_v50, %s2489_s22  ;;  %v1135_v56 = vmax.f32 %v1114_v8, 0.0 }
 0x425   : > { %v1151_v55 = vpack.c.bf16 %v1135_v56, %v1135_v56 }
 0x426   : > { %1479 = vmatpush.bf16.msra.mxu0 %v2093_v38 }
 0x427   : > { %v1181_v16 = vunpack.c.l.b16 %v1151_v55 }
 0x428   : > { %v1115_v13 = vpop.f32.mrf.mxu3 }
 0x429   : > { %v1116_v28 = vadd.f32 %v3245_v45, %v1115_v13 }
 0x42b   : > { %v1136_v29 = vmax.f32 %v1116_v28, 0.0 }
 0x42d   : > { %v1152_v49 = vpack.c.bf16 %v1136_v29, %v1136_v29 }
 0x42f   : > { %v1182_v36 = vunpack.c.l.b16 %v1152_v49 }
 0x430   : > { %v1118_v5 = vpop.f32.mrf.mxu3 }
 0x431   : > { %v1189_v59 = vpack.c.b16 %v1182_v36, %v1181_v16  ;;  %v1119_v1 = vadd.f32 %v3245_v45, %v1118_v5  ;;  %v2098_v16 = vld [vmem:[#allocation5 + $0xb0] sm:$0xff] }
 0x433   : > { %1207 = vrot.lane.b32.xlu1 %v1189_v59, %s2489_s22  ;;  %1221 = vrot.lane.b32.xlu0 %v1189_v59, %s2490_s23  ;;  %v1137_v40 = vmax.f32 %v1119_v1, 0.0 }
 0x435   : > { %v1153_v19 = vpack.c.bf16 %v1137_v40, %v1137_v40  ;;  %v2097_v40 = vld [vmem:[#allocation5 + $0xa8] sm:$0xff] }
 0x437   : > { %v1192_v10 = vunpack.c.l.b16 %v1153_v19 }
 0x438   : > { %v1120_v6 = vpop.f32.mrf.mxu3 }
 0x439   : > { %v1121_v32 = vadd.f32 %v3245_v45, %v1120_v6 }
 0x43b   : > { %v1138_v20 = vmax.f32 %v1121_v32, 0.0 }
 0x43d   : > { %v1154_v2 = vpack.c.bf16 %v1138_v20, %v1138_v20  ;;  %v1212_v63 = vpop.permute.xlu2 %1211 }
 0x43f   : > { %v1193_v12 = vunpack.c.l.b16 %v1154_v2 }
 0x441   : > { %v1194_v48 = vpack.c.b16 %v1193_v12, %v1192_v10 }
 0x443   : > { %1209 = vrot.lane.b32.xlu0 %v1194_v48, %s2489_s22  ;;  %1223 = vrot.lane.b32.xlu2 %v1194_v48, %s2490_s23 }
 0x445   : > { %v1196_v30 = vpop.permute.xlu1 %1195 }
 0x446   : > { %v1226_v42 = vsel %vm346_vm0, 0, %v1196_v30  ;;  %v2100_v30 = vld [vmem:[#allocation5 + $0xc0] sm:$0xff] }
 0x447   : > { %v1249_v35 = vsel %vm990_vm4, %v1226_v42, %v1212_v63 }
 0x448   : > { %1981 = vmatmul.msk.bf16.vlgmr.msrb.gmra.mxu1 %vm1057_vm5, %v1249_v35 }
 0x44d   : > { %v1200_v34 = vpop.permute.xlu2 %1199 }
 0x44e   : > { %v1232_v53 = vsel %vm346_vm0, %v3255_v11, %v1200_v34 }
 0x455   : > { %v1198_v51 = vpop.permute.xlu0 %1197 }
 0x456   : > { %v1229_v45 = vsel %vm346_vm0, %v3249_v39, %v1198_v51  ;;  %v2099_v51 = vld [vmem:[#allocation5 + $0xb8] sm:$0xff] }
 0x465   : > { %v1214_v43 = vpop.permute.xlu1 %1213 }
 0x466   : > { %v1251_v26 = vsel %vm990_vm4, %v1229_v45, %v1214_v43 }
 0x467   : > { %1982 = vmatmul.msk.bf16.gmra.mxu1 %vm1057_vm5, %v1251_v26 }
 0x46d   : > { %v1218_v37 = vpop.permute.xlu2 %1217 }
 0x475   : > { %v1216_v24 = vpop.permute.xlu0 %1215  ;;  %v1202_v17 = vpop.permute.xlu1 %1201 }
 0x476   : > { %v1253_v62 = vsel %vm990_vm4, %v1232_v53, %v1216_v24  ;;  %v1235_v31 = vsel %vm346_vm0, %v3263_v14, %v1202_v17 }
 0x477   : > { %1983 = vmatmul.msk.bf16.gmra.mxu1 %vm1057_vm5, %v1253_v62  ;;  %v1255_v39 = vsel %vm990_vm4, %v1235_v31, %v1218_v37  ;;  %v2102_v31 = vld [vmem:[#allocation5 + $0xd0] sm:$0xff] }
 0x47d   : > { %v1206_v23 = vpop.permute.xlu2 %1205 }
 0x47e   : > { %v1241_v41 = vsel %vm346_vm0, %v3279_v9, %v1206_v23 }
 0x485   : > { %v1204_v44 = vpop.permute.xlu0 %1203 }
 0x486   : > { %v1238_v47 = vsel %vm346_vm0, %v3271_v21, %v1204_v44 }
 0x487   : > { %1984 = vmatmul.msk.bf16.gmra.mxu1 %vm1057_vm5, %v1255_v39 }
 0x495   : > { %v1220_v3 = vpop.permute.xlu1 %1219 }
 0x496   : > { %v1257_v11 = vsel %vm990_vm4, %v1238_v47, %v1220_v3  ;;  %v2101_v47 = vld [vmem:[#allocation5 + $0xc8] sm:$0xff] }
 0x497   : > { %1985 = vmatmul.msk.bf16.gmra.mxu1 %vm1057_vm5, %v1257_v11 }
 0x49d   : > { %v1224_v25 = vpop.permute.xlu2 %1223 }
 0x4a5   : > { %v1222_v57 = vpop.permute.xlu0 %1221  ;;  %v1208_v54 = vpop.permute.xlu1 %1207 }
 0x4a6   : > { %v1259_v14 = vsel %vm990_vm4, %v1241_v41, %v1222_v57  ;;  %v1244_v21 = vsel %vm346_vm0, %v3287_v50, %v1208_v54  ;;  %v3332_v50 = vld [vmem:[#allocation7 + $0x4] ss:$0 sm:$0xff] }
 0x4a7   : > { %1986 = vmatmul.msk.bf16.gmra.mxu1 %vm1057_vm5, %v1259_v14  ;;  %v1261_v18 = vsel %vm990_vm4, %v1244_v21, %v1224_v25  ;;  %v2104_v21 = vld [vmem:[#allocation5 + $0xe0] sm:$0xff] }
 0x4b5   : > { %v1210_v9 = vpop.permute.xlu0 %1209 }
 0x4b6   : > { %v1247_v15 = vsel %vm346_vm0, %v1189_v59, %v1210_v9  ;;  %v2105_v59 = vld [vmem:[#allocation5 + $0xe8] sm:$0xff] }
 0x4b7   : > { %1987 = vmatmul.msk.bf16.gmra.mxu1 %vm1057_vm5, %v1261_v18  ;;  %v1262_v7 = vsel %vm990_vm4, %v1247_v15, %v3239_v60  ;;  %1677 = vmatpush.bf16.msrb.mxu2 %v2105_v59 }
 0x4c5   : > { %v1338_v22 = vpop.f32.mrf.mxu1 }
 0x4c6   : > { %v1339_v1 = vadd.f32 %v3332_v50, %v1338_v22 }
 0x4c7   : > { %1988 = vmatmul.msk.bf16.gmra.mxu1 %vm1057_vm5, %v1262_v7 }
 0x4c8   : > { %v1378_v32 = vmax.f32 %v1339_v1, 0.0 }
 0x4ca   : > { %v1394_v2 = vpack.c.bf16 %v1378_v32, %v1378_v32 }
 0x4cc   : > { %v1454_v12 = vunpack.c.l.b16 %v1394_v2 }
 0x4cd   : > { %v1340_v58 = vpop.f32.mrf.mxu1 }
 0x4ce   : > { %v1341_v36 = vadd.f32 %v3332_v50, %v1340_v58 }
 0x4d0   : > { %v1379_v6 = vmax.f32 %v1341_v36, 0.0 }
 0x4d2   : > { %v1395_v20 = vpack.c.bf16 %v1379_v6, %v1379_v6 }
 0x4d4   : > { %v1455_v10 = vunpack.c.l.b16 %v1395_v20 }
 0x4d6   : > { %v1456_v63 = vpack.c.b16 %v1455_v10, %v1454_v12 }
 0x4e4   : > { %v1343_v0 = vpop.f32.mrf.mxu1 }
 0x4e5   : > { %v1344_v8 = vadd.f32 %v3332_v50, %v1343_v0 }
 0x4e7   : > { %v1380_v52 = vmax.f32 %v1344_v8, 0.0  ;;  %v2108_v8 = vld [vmem:[#allocation5 + $0x100] sm:$0xff] }
 0x4e9   : > { %v1396_v28 = vpack.c.bf16 %v1380_v52, %v1380_v52 }
 0x4eb   : > { %v1420_v55 = vunpack.c.l.b16 %v1396_v28 }
 0x4ec   : > { %v1345_v56 = vpop.f32.mrf.mxu1 }
 0x4ed   : > { %v1346_v13 = vadd.f32 %v3332_v50, %v1345_v56 }
 0x4ef   : > { %v1381_v27 = vmax.f32 %v1346_v13, 0.0 }
 0x4f1   : > { %v1397_v60 = vpack.c.bf16 %v1381_v27, %v1381_v27  ;;  %v2107_v27 = vld [vmem:[#allocation5 + $0xf8] sm:$0xff] }
 0x4f3   : > { %v1421_v29 = vunpack.c.l.b16 %v1397_v60 }
 0x4f4   : > { %v1348_v49 = vpop.f32.mrf.mxu1 }
 0x4f5   : > { %v1422_v5 = vpack.c.b16 %v1421_v29, %v1420_v55  ;;  %v1349_v35 = vadd.f32 %v3332_v50, %v1348_v49 }
 0x4f7   : > { %1997 = vmatmul.msk.bf16.vlgmr.msrb.gmra.mxu0 %vm346_vm0, %v1422_v5  ;;  %v1382_v43 = vmax.f32 %v1349_v35, 0.0 }
 0x4f8   : > { %1516 = vmatpush.bf16.msrb.mxu0 %v2098_v16 }
 0x4f9   : > { %v1398_v53 = vpack.c.bf16 %v1382_v43, %v1382_v43 }
 0x4fb   : > { %v1492_v62 = vunpack.c.l.b16 %v1398_v53 }
 0x4fc   : > { %v1350_v19 = vpop.f32.mrf.mxu1  ;;  %1517 = vmatpush.bf16.msrb.mxu0 %v2097_v40 }
 0x4fd   : > { %v1351_v42 = vadd.f32 %v3332_v50, %v1350_v19 }
 0x4ff   : > { %v1383_v45 = vmax.f32 %v1351_v42, 0.0 }
 0x501   : > { %v1399_v34 = vpack.c.bf16 %v1383_v45, %v1383_v45 }
 0x503   : > { %v1493_v24 = vunpack.c.l.b16 %v1399_v34 }
 0x504   : > { %v1353_v48 = vpop.f32.mrf.mxu1 }
 0x505   : > { %v1494_v37 = vpack.c.b16 %v1493_v24, %v1492_v62  ;;  %v1354_v44 = vadd.f32 %v3332_v50, %v1353_v48 }
 0x507   : > { %2006 = vmatmul.msk.bf16.vlgmr.msra.gmra.mxu0 %vm346_vm0, %v1456_v63  ;;  %v1384_v11 = vmax.f32 %v1354_v44, 0.0 }
 0x508   : > { %1556 = vmatpush.bf16.msra.mxu0 %v2100_v30 }
 0x509   : > { %v1400_v57 = vpack.c.bf16 %v1384_v11, %v1384_v11 }
 0x50b   : > { %v1532_v33 = vunpack.c.l.b16 %v1400_v57 }
 0x50c   : > { %v1355_v26 = vpop.f32.mrf.mxu1  ;;  %1557 = vmatpush.bf16.msra.mxu0 %v2099_v51 }
 0x50d   : > { %v1356_v39 = vadd.f32 %v3332_v50, %v1355_v26 }
 0x50f   : > { %v1385_v3 = vmax.f32 %v1356_v39, 0.0 }
 0x511   : > { %v1401_v41 = vpack.c.bf16 %v1385_v3, %v1385_v3 }
 0x513   : > { %v1533_v14 = vunpack.c.l.b16 %v1401_v41  ;;  %v2109_v41 = vld [vmem:[#allocation5 + $0x108] sm:$0xff] }
 0x514   : > { %v1358_v17 = vpop.f32.mrf.mxu1 }
 0x515   : > { %v1534_v25 = vpack.c.b16 %v1533_v14, %v1532_v33  ;;  %v1359_v61 = vadd.f32 %v3332_v50, %v1358_v17 }
 0x517   : > { %2015 = vmatmul.msk.bf16.vlgmr.msrb.gmra.mxu0 %vm346_vm0, %v1494_v37  ;;  %v1386_v15 = vmax.f32 %v1359_v61, 0.0 }
 0x518   : > { %1596 = vmatpush.bf16.msrb.mxu0 %v2102_v31 }
 0x519   : > { %v1402_v46 = vpack.c.bf16 %v1386_v15, %v1386_v15 }
 0x51b   : > { %v1572_v0 = vunpack.c.l.b16 %v1402_v46 }
 0x51c   : > { %v1360_v23 = vpop.f32.mrf.mxu1  ;;  %1597 = vmatpush.bf16.msrb.mxu0 %v2101_v47 }
 0x51d   : > { %v1361_v18 = vadd.f32 %v3332_v50, %v1360_v23 }
 0x51f   : > { %v1387_v9 = vmax.f32 %v1361_v18, 0.0 }
 0x521   : > { %v1403_v22 = vpack.c.bf16 %v1387_v9, %v1387_v9 }
 0x523   : > { %v1573_v58 = vunpack.c.l.b16 %v1403_v22 }
 0x524   : > { %v1363_v54 = vpop.f32.mrf.mxu1 }
 0x525   : > { %v1574_v52 = vpack.c.b16 %v1573_v58, %v1572_v0  ;;  %v1364_v13 = vadd.f32 %v3332_v50, %v1363_v54  ;;  %v2325_v0 = vld [vmem:[#allocation7 + $0x5] ss:$0 sm:$0xff] }
 0x527   : > { %2024 = vmatmul.msk.bf16.vlgmr.msra.gmra.mxu0 %vm346_vm0, %v1534_v25  ;;  %v1388_v55 = vmax.f32 %v1364_v13, 0.0 }
 0x528   : > { %1636 = vmatpush.bf16.msra.mxu0 %v2104_v21 }
 0x529   : > { %v1404_v5 = vpack.c.bf16 %v1388_v55, %v1388_v55  ;;  %v2326_v55 = vld [vmem:[#allocation7 + $0x6] ss:$0 sm:$0xff] }
 0x52b   : > { %v1612_v32 = vunpack.c.l.b16 %v1404_v5 }
 0x52c   : > { %v1365_v7 = vpop.f32.mrf.mxu1  ;;  %1637 = vmatpush.bf16.msra.mxu0 %v2103_v4 }
 0x52d   : > { %v1366_v56 = vadd.f32 %v3332_v50, %v1365_v7 }
 0x52f   : > { %v1389_v60 = vmax.f32 %v1366_v56, 0.0 }
 0x531   : > { %v1405_v16 = vpack.c.bf16 %v1389_v60, %v1389_v60 }
 0x533   : > { %v1613_v40 = vunpack.c.l.b16 %v1405_v16 }
 0x534   : > { %v1368_v38 = vpop.f32.mrf.mxu1 }
 0x535   : > { %v1369_v28 = vadd.f32 %v3332_v50, %v1368_v38  ;;  %v1614_v10 = vpack.c.b16 %v1613_v40, %v1612_v32 }
 0x537   : > { %2033 = vmatmul.msk.bf16.vlgmr.msrb.gmra.mxu0 %vm346_vm0, %v1574_v52  ;;  %v1390_v29 = vmax.f32 %v1369_v28, 0.0 }
 0x538   : > { %1716 = vmatpush.bf16.msrb.mxu0 %v2108_v8 }
 0x539   : > { %v1406_v59 = vpack.c.bf16 %v1390_v29, %v1390_v29 }
 0x53b   : > { %v1652_v19 = vunpack.c.l.b16 %v1406_v59 }
 0x53c   : > { %v1370_v49 = vpop.f32.mrf.mxu1  ;;  %1717 = vmatpush.bf16.msrb.mxu0 %v2107_v27 }
 0x53d   : > { %v1371_v36 = vadd.f32 %v3332_v50, %v1370_v49 }
 0x53f   : > { %v1391_v1 = vmax.f32 %v1371_v36, 0.0 }
 0x541   : > { %v1407_v6 = vpack.c.bf16 %v1391_v1, %v1391_v1 }
 0x543   : > { %v1653_v20 = vunpack.c.l.b16 %v1407_v6 }
 0x544   : > { %v1373_v2 = vpop.f32.mrf.mxu1 }
 0x545   : > { %v1654_v12 = vpack.c.b16 %v1653_v20, %v1652_v19  ;;  %v1374_v48 = vadd.f32 %v3332_v50, %v1373_v2 }
 0x547   : > { %2042 = vmatmul.msk.bf16.vlgmr.msra.gmra.mxu0 %vm346_vm0, %v1614_v10  ;;  %2051 = vmatmul.msk.bf16.vlgmr.msrb.gmra.mxu2 %vm346_vm0, %v1654_v12  ;;  %v1392_v30 = vmax.f32 %v1374_v48, 0.0 }
 0x549   : > { %v1408_v35 = vpack.c.bf16 %v1392_v30, %v1392_v30 }
 0x54b   : > { %v1692_v43 = vunpack.c.l.b16 %v1408_v35 }
 0x54c   : > { %v1375_v63 = vpop.f32.mrf.mxu1 }
 0x54d   : > { %v1376_v42 = vadd.f32 %v3332_v50, %v1375_v63  ;;  %v2110_v50 = vld [vmem:[#allocation5 + $0x110] sm:$0xff] }
 0x54e   : > { %1760 = vmatpush.bf16.msra.mxu2 %v2110_v50 }
 0x54f   : > { %v1393_v51 = vmax.f32 %v1376_v42, 0.0 }
 0x551   : > { %v1409_v45 = vpack.c.bf16 %v1393_v51, %v1393_v51 }
 0x552   : > { %1761 = vmatpush.bf16.msra.mxu2 %v2109_v41 }
 0x553   : > { %v1693_v26 = vunpack.c.l.b16 %v1409_v45 }
 0x555   : > { %v1694_v34 = vpack.c.b16 %v1693_v26, %v1692_v43 }
 0x557   : > { %2060 = vmatmul.msk.bf16.vlgmr.msrb.gmra.mxu0 %vm346_vm0, %v1694_v34 }
 0x574   : > { %v1447_v53 = vpop.f32.mrf.mxu0 }
 0x57c   : > { %v1449_v24 = vpop.f32.mrf.mxu0 }
 0x584   : > { %v1481_v62 = vpop.f32.mrf.mxu0 }
 0x585   : > { %v1482_v17 = vadd.f32 %v1481_v62, %v1447_v53 }
 0x58c   : > { %v1483_v31 = vpop.f32.mrf.mxu0 }
 0x58d   : > { %v1484_v37 = vadd.f32 %v1483_v31, %v1449_v24 }
 0x594   : > { %v1519_v39 = vpop.f32.mrf.mxu0 }
 0x595   : > { %v1524_v54 = vadd.f32 %v1519_v39, %v1482_v17 }
 0x59c   : > { %v1521_v44 = vpop.f32.mrf.mxu0 }
 0x59d   : > { %v1525_v25 = vadd.f32 %v1521_v44, %v1484_v37 }
 0x5a4   : > { %v1559_v47 = vpop.f32.mrf.mxu0 }
 0x5a5   : > { %v1564_v21 = vadd.f32 %v1559_v47, %v1524_v54 }
 0x5ac   : > { %v1561_v3 = vpop.f32.mrf.mxu0 }
 0x5ad   : > { %v1565_v4 = vadd.f32 %v1561_v3, %v1525_v25 }
 0x5b4   : > { %v1599_v11 = vpop.f32.mrf.mxu0 }
 0x5b5   : > { %v1604_v18 = vadd.f32 %v1599_v11, %v1564_v21 }
 0x5bc   : > { %v1601_v23 = vpop.f32.mrf.mxu0 }
 0x5bd   : > { %v1605_v15 = vadd.f32 %v1601_v23, %v1565_v4 }
 0x5c4   : > { %v1639_v57 = vpop.f32.mrf.mxu0 }
 0x5c5   : > { %v1644_v9 = vadd.f32 %v1639_v57, %v1604_v18 }
 0x5ca   : > { %v1679_v33 = vpop.f32.mrf.mxu2 }
 0x5cb   : > { %v1684_v7 = vadd.f32 %v1679_v33, %v1644_v9 }
 0x5cc   : > { %v1641_v14 = vpop.f32.mrf.mxu0 }
 0x5cd   : > { %v1645_v46 = vadd.f32 %v1641_v14, %v1605_v15 }
 0x5d2   : > { %v1681_v22 = vpop.f32.mrf.mxu2 }
 0x5d3   : > { %v1685_v38 = vadd.f32 %v1681_v22, %v1645_v46 }
 0x5d4   : > { %v1719_v61 = vpop.f32.mrf.mxu0 }
 0x5d5   : > { %v1724_v58 = vadd.f32 %v1719_v61, %v1684_v7 }
 0x5d7   : > { %v1728_v52 = vadd.f32 %v2325_v0, %v1724_v58 }
 0x5d9   : > { %v1730_v28 = vmax.f32 %v1728_v52, 0.0 }
 0x5dc   : > { %v1721_v8 = vpop.f32.mrf.mxu0 }
 0x5dd   : > { %v1725_v56 = vadd.f32 %v1721_v8, %v1685_v38 }
 0x5df   : > { %v1729_v13 = vadd.f32 %v2325_v0, %v1725_v56 }
 0x5e1   : > { %v1731_v27 = vmax.f32 %v1729_v13, 0.0 }
 0x5e3   : > { %v1732_v60 = vpack.c.bf16 %v1731_v27, %v1730_v28 }
 0x5e5   : > { %2069 = vmatmul.msk.bf16.vlgmr.msra.gmra.mxu2 %vm346_vm0, %v1732_v60 }
 0x668   : > { %v1763_v29 = vpop.f32.mrf.mxu2 }
 0x669   : > { %v1764_v49 = vadd.f32 %v2326_v55, %v1763_v29 }
 0x66b   : > { %1768 = vst [vmem:[%s246_s30] sm:$0xff] %v1764_v49 }
 0x670   : > { %v1765_v16 = vpop.f32.mrf.mxu2 }
 0x671   : > { %v1766_v36 = vadd.f32 %v2326_v55, %v1765_v16 }
 0x673   : > { %1769 = vst [vmem:[%s246_s30 + $0x8] sm:$0xff] %v1766_v36 }
 0x674   : > { %2432 = shalt.err (!%p2429_p9)
}
 0x675   : > { %s2491_s4 = smov 128   ;;  %s2492_s22 = smov 8  }
 0x676   : > { %2251 = dma.vmem_to_hbm [thread:$0]  (%p2565_p11), %s1784_s11, 256, %s1786_s19, %s1771_s20, %s2491_s4, %s2491_s4, %s2492_s22  }
 0x677 PF: > { %s1800_s23 = sand.u32 1, %s2463_s12   ;;  %p2261_p10 = pnand %p1882_p2, %p2569_p12 }
 0x678   : > { %s1801_s26 = scalar_lea.sflag [#allocation4], %s1800_s23 }
 0x679   : > { %p2262_p13 = pneg %p2261_p10 }
 0x67b   : > { %2458 = dma.done.wait (%p2262_p13), %s1801_s26, 256  }
 0x67c   : > { %2460 = vsyncadd (%p2262_p13), %s1801_s26, 4294967040  ;;  %p17_p1 = scmp.ge.s32.totalorder %s2538_s18, 4   ;;  %s3466_s12 = smov %s2467_s13 }
 0x67d   : > { %s3467_s13 = smov %s2471_s14  ;;  %s3468_s14 = smov %s2550_s21 }
 0x67e   : > { %s3469_s15 = smov %s2538_s18  ;;  %19 = sbr.rel (!%p17_p1) target bundleno = 6 (0x6), region = 90 }
 0x683   :  { %1807 = vsyncpa [#allocation3], 1 }
 0x684   :  { %1809 = vsyncpa [#allocation3 + $0x1], 1 }
 0x685   :  { %1810 = vsyncpa [#allocation6], 1 }
 0x686   :  { %1811 = vsyncpa [#allocation4], 1 }
 0x687   :  { %1813 = vsyncpa [#allocation4 + $0x1], 1 }

</bundles_post_ra>
